<compile_context>
chip_gen: v5e
topology: v5e:2x2
jax: 0.10.0
libtpu: 0.0.40
codegen_flags: <defaults>
</compile_context>

<pallas_src>
import math
import functools

import jax
import jax.numpy as jnp
from jax import lax
from jax.experimental import pallas as pl
from jax.experimental.pallas import tpu as pltpu


# ----------------------------- in-kernel helpers -----------------------------

def _layernorm(x, gamma, beta, eps=1e-5):
    mu = jnp.mean(x, axis=-1, keepdims=True)
    var = jnp.mean((x - mu) ** 2, axis=-1, keepdims=True)   # biased var (PyTorch)
    return (x - mu) * lax.rsqrt(var + eps) * gamma + beta


def _gelu_exact(x):
    # PyTorch nn.GELU() default: 0.5 * x * (1 + erf(x / sqrt(2)))
    return 0.5 * x * (1.0 + lax.erf(x * (1.0 / math.sqrt(2.0))))


def _mha(q, k, v, wo_ref, bt, tq, tk, nhead, hd):
    """Multi-head attention with the output projection folded per head.

    q: (bt*tq, D) f32 (already scaled).  k, v: (bt*tk, D) f32.
    wo_ref: (nhead, hd, D) bf16 resident weight (= W_out.T split per head).
    Returns (bt*tq, D) f32 == concat_h(softmax(q_h k_h^T) v_h) @ W_out.T.
    """
    D = nhead * hd
    q3 = q.reshape(bt, tq, D).astype(jnp.bfloat16)
    k3 = k.reshape(bt, tk, D).astype(jnp.bfloat16)
    v3 = v.reshape(bt, tk, D).astype(jnp.bfloat16)
    out = jnp.zeros((bt * tq, D), jnp.float32)
    for h in range(nhead):                          # static unroll; nhead is small
        lo = h * hd
        s = jnp.einsum('bqd,bkd->bqk',
                       q3[:, :, lo:lo + hd], k3[:, :, lo:lo + hd],
                       preferred_element_type=jnp.float32)
        s = s - jnp.max(s, axis=-1, keepdims=True)
        p = jnp.exp(s)
        p = p * pl.reciprocal(jnp.sum(p, axis=-1, keepdims=True), approx=True)
        ch = jnp.einsum('bqk,bkd->bqd',
                        p.astype(jnp.bfloat16), v3[:, :, lo:lo + hd],
                        preferred_element_type=jnp.float32)
        out = out + jnp.dot(ch.reshape(bt * tq, hd).astype(jnp.bfloat16),
                            wo_ref[h], preferred_element_type=jnp.float32)
    return out


# --------------------------------- the kernel --------------------------------

def transformer_block_kernel(
    x_ref, vis_ref,
    sa_wqkv_ref, sa_wo_ref,
    ca_wq_ref, ca_wkv_ref, ca_wo_ref,
    ff_w1_ref, ff_w2_ref,
    bias_ref, ff_b1_ref,
    o_ref,
    *, bt, seq_q, seq_kv, nhead):
    D = x_ref.shape[-1]
    hd = D // nhead
    scale = 1.0 / math.sqrt(hd)

    def brow(i):                       # (1, D) f32 row of the packed bias slab
        return bias_ref[i:i + 1, :]

    x = x_ref[...]                     # (bt*seq_q, D)  f32 residual stream
    vis = vis_ref[...]                 # (bt*seq_kv, D) f32

    # --- self attention + residual + norm1 ---
    qkv = jnp.dot(x.astype(jnp.bfloat16), sa_wqkv_ref[...],
                  preferred_element_type=jnp.float32)
    q = (qkv[:, 0:D] + brow(0)) * scale             # scale folded into q once
    k = qkv[:, D:2 * D] + brow(1)
    v = qkv[:, 2 * D:3 * D] + brow(2)
    attn = _mha(q, k, v, sa_wo_ref, bt, seq_q, seq_q, nhead, hd) + brow(3)
    x = _layernorm(x + attn, brow(4), brow(5))

    # --- cross attention (queries=x, keys/values=vision) + residual + norm2 ---
    qc = (jnp.dot(x.astype(jnp.bfloat16), ca_wq_ref[...],
                  preferred_element_type=jnp.float32) + brow(6)) * scale
    kv = jnp.dot(vis.astype(jnp.bfloat16), ca_wkv_ref[...],
                 preferred_element_type=jnp.float32)
    kc = kv[:, 0:D] + brow(7)
    vc = kv[:, D:2 * D] + brow(8)
    cross = _mha(qc, kc, vc, ca_wo_ref, bt, seq_q, seq_kv, nhead, hd) + brow(9)
    x = _layernorm(x + cross, brow(10), brow(11))

    # --- feed-forward (Linear -> GELU -> Linear; dropout = identity) ---
    h = jnp.dot(x.astype(jnp.bfloat16), ff_w1_ref[...],
                preferred_element_type=jnp.float32) + ff_b1_ref[...]
    h = _gelu_exact(h)                               # f32 elementwise
    ff = jnp.dot(h.astype(jnp.bfloat16), ff_w2_ref[...],
                 preferred_element_type=jnp.float32) + brow(12)
    x = _layernorm(x + ff, brow(13), brow(14))

    o_ref[...] = x.astype(o_ref.dtype)


# ----------------------------- wrapper-side plumbing ---------------------------

def _prep_weights(params, D, nhead, mm_dtype=jnp.bfloat16):
    """Pre-transpose / pre-split / pre-cast all parameters (free layout plumbing)."""
    hd = D // nhead

    def tmat(w):                                  # (out, in) -> (in, out), bf16
        return jnp.asarray(w, jnp.float32).T.astype(mm_dtype)

    def vec(name):
        return jnp.asarray(params[name], jnp.float32).reshape(-1)

    p = params
    sa_wqkv = tmat(p["sa_in_w"])                            # (D, 3D)
    sa_wo = tmat(p["sa_out_w"]).reshape(nhead, hd, D)       # per-head fold
    ca_wq = tmat(p["ca_in_w"][0:D])                         # (D, D)
    ca_wkv = tmat(p["ca_in_w"][D:3 * D])                    # (D, 2D) [Wk.T|Wv.T]
    ca_wo = tmat(p["ca_out_w"]).reshape(nhead, hd, D)
    ff_w1 = tmat(p["ff_w1"])                                # (D, 4D)
    ff_w2 = tmat(p["ff_w2"])                                # (4D, D)
    ff_b1 = jnp.asarray(p["ff_b1"], jnp.float32).reshape(1, -1)   # (1, 4D)

    # Pack every D-wide bias / LayerNorm vector into one f32 slab (16, D).
    rows = [
        vec("sa_in_b")[0:D], vec("sa_in_b")[D:2 * D], vec("sa_in_b")[2 * D:3 * D],
        vec("sa_out_b"),
        vec("n1_g"), vec("n1_b"),
        vec("ca_in_b")[0:D], vec("ca_in_b")[D:2 * D], vec("ca_in_b")[2 * D:3 * D],
        vec("ca_out_b"),
        vec("n2_g"), vec("n2_b"),
        vec("ff_b2"),
        vec("n3_g"), vec("n3_b"),
        jnp.zeros((D,), jnp.float32),                        # pad to 16 rows
    ]
    bias_slab = jnp.stack(rows, axis=0)                      # (16, D) f32

    weights = [sa_wqkv, sa_wo, ca_wq, ca_wkv, ca_wo, ff_w1, ff_w2]
    return weights, bias_slab, ff_b1


def _default_target_rows():
    try:
        kind = jax.devices()[0].device_kind.lower()
    except Exception:
        return 256
    if "v6" in kind:
        return 512        # 2x256 MXU + 128 MiB VMEM: bigger row blocks pay off
    return 256            # v5e (128-wide MXU) / v7x (64 MiB VMEM) / default


def _vmem_limit_bytes():
    cap = None
    try:
        cap = int(pltpu.get_tpu_info().vmem_capacity_bytes)
    except Exception:
        cap = None
    if not cap:
        try:
            kind = jax.devices()[0].device_kind.lower()
            cap = (64 if "7" in kind else 128) * 1024 * 1024
        except Exception:
            cap = 128 * 1024 * 1024
    return (cap * 3) // 4          # leave headroom for compiler-internal scratch


def _pick_block_batch(B, T, S, target_rows=256):
    """Pick a batch-chunk size bt: divisor of B, sublane-friendly row blocks,
    ~target_rows rows per grid step, and (when possible) grid = B//bt >= 2 so
    both v7x TensorCores get work."""
    cap = max(1, target_rows // max(T, 1))
    valid = [d for d in range(1, B + 1)
             if B % d == 0 and (d * T) % 8 == 0 and (d * S) % 8 == 0]
    if not valid:
        return B                                   # full-array block: always legal
    pref = [d for d in valid if d <= cap and B // d >= 2]
    if pref:
        return max(pref)
    under_cap = [d for d in valid if d <= cap]
    if under_cap:
        return max(under_cap)
    return min(valid)


def transformer_block(x, vision_features, params, nhead):
    B, T, D = x.shape
    S = vision_features.shape[1]
    assert D % nhead == 0, "d_model must be divisible by nhead"

    weights, bias_slab, ff_b1 = _prep_weights(params, D, nhead)
    bt = _pick_block_batch(B, T, S, target_rows=_default_target_rows())
    grid = (B // bt,)

    # Flatten (batch, seq) rows: projections / FFN operate on bt*T rows per step.
    xr = x.reshape(B * T, D)
    vr = vision_features.reshape(B * S, D)

    # Weights / bias slabs: whole-array VMEM residents (no pipelining, no
    # double-buffering, no per-step DMA descriptors).
    resident = pl.BlockSpec(memory_space=pltpu.MemorySpace.VMEM)
    in_specs = (
        [pl.BlockSpec((bt * T, D), lambda g: (g, 0)),
         pl.BlockSpec((bt * S, D), lambda g: (g, 0))]
        + [resident] * (len(weights) + 2)
    )
    out_spec = pl.BlockSpec((bt * T, D), lambda g: (g, 0))

    kernel = functools.partial(transformer_block_kernel,
                               bt=bt, seq_q=T, seq_kv=S, nhead=nhead)

    out = pl.pallas_call(
        kernel,
        out_shape=jax.ShapeDtypeStruct((B * T, D), x.dtype),
        grid_spec=pltpu.PrefetchScalarGridSpec(
            num_scalar_prefetch=0,
            grid=grid,
            in_specs=in_specs,
            out_specs=out_spec,
        ),
        compiler_params=pltpu.CompilerParams(
            dimension_semantics=("parallel",),
            vmem_limit_bytes=_vmem_limit_bytes(),
        ),
    )(xr, vr, *weights, bias_slab, ff_b1)
    return out.reshape(B, T, D)


# ------------------------------ parameter init --------------------------------

def init_params(key, d_model):
    D = d_model
    ks = jax.random.split(key, 10)

    def w(k, shape, scale=0.05):
        return jax.random.normal(k, shape, jnp.float32) * scale

    return {
        # self-attention (PyTorch layout: in_proj (3D, D), out_proj (D, D))
        "sa_in_w": w(ks[0], (3 * D, D)),
        "sa_in_b": w(ks[1], (3 * D,), 0.01),
        "sa_out_w": w(ks[2], (D, D)),
        "sa_out_b": jnp.zeros((D,), jnp.float32),
        "n1_g": jnp.ones((D,), jnp.float32),
        "n1_b": jnp.zeros((D,), jnp.float32),
        # cross-attention
        "ca_in_w": w(ks[3], (3 * D, D)),
        "ca_in_b": w(ks[4], (3 * D,), 0.01),
        "ca_out_w": w(ks[5], (D, D)),
        "ca_out_b": jnp.zeros((D,), jnp.float32),
        "n2_g": jnp.ones((D,), jnp.float32),
        "n2_b": jnp.zeros((D,), jnp.float32),
        # feed-forward
        "ff_w1": w(ks[6], (4 * D, D)),
        "ff_b1": w(ks[7], (4 * D,), 0.01),
        "ff_w2": w(ks[8], (D, 4 * D)),
        "ff_b2": w(ks[9], (D,), 0.01),
        "n3_g": jnp.ones((D,), jnp.float32),
        "n3_b": jnp.zeros((D,), jnp.float32),
    }


# ----------------------------------- main --------------------------------------

if __name__ == "__main__":
    B, T, S, D, NHEAD = 2, 8, 8, 32, 4

    key = jax.random.PRNGKey(0)
    kx, kv, kp = jax.random.split(key, 3)
    x = jax.random.normal(kx, (B, T, D), jnp.float32)
    vision_features = jax.random.normal(kv, (B, S, D), jnp.float32)
    params = init_params(kp, D)

    out = transformer_block(x, vision_features, params, NHEAD)
    out = jax.block_until_ready(out)
    assert out.shape == (B, T, D) and out.dtype == jnp.float32
    assert bool(jnp.all(jnp.isfinite(out)))
    print("KERNEL_OK")
</pallas_src>

<mosaic_0001>
module attributes {stable_mosaic.version = 11 : i64} {
  func.func @transformer_block_kernel(%arg0: i32, %arg1: memref<8x32xf32, #tpu.memory_space<vmem>>, %arg2: memref<8x32xf32, #tpu.memory_space<vmem>>, %arg3: memref<32x96xbf16, #tpu.memory_space<vmem>>, %arg4: memref<4x8x32xbf16, #tpu.memory_space<vmem>>, %arg5: memref<32x32xbf16, #tpu.memory_space<vmem>>, %arg6: memref<32x64xbf16, #tpu.memory_space<vmem>>, %arg7: memref<4x8x32xbf16, #tpu.memory_space<vmem>>, %arg8: memref<32x128xbf16, #tpu.memory_space<vmem>>, %arg9: memref<128x32xbf16, #tpu.memory_space<vmem>>, %arg10: memref<16x32xf32, #tpu.memory_space<vmem>>, %arg11: memref<1x128xf32, #tpu.memory_space<vmem>>, %arg12: memref<8x32xf32, #tpu.memory_space<vmem>>) attributes {dimension_semantics = [#tpu.dimension_semantics<parallel>], iteration_bounds = array<i64: 2>, scalar_prefetch = 0 : i64, scratch_operands = 0 : i64, tpu.core_type = #tpu.core_type<tc>, window_params = [{transform_indices = @transform_0, window_bounds = array<i64: 8, 32>}, {transform_indices = @transform_1, window_bounds = array<i64: 8, 32>}, {pipeline_mode = #tpu.pipeline_mode<synchronous>, transform_indices = @transform_2, window_bounds = array<i64: 32, 96>}, {pipeline_mode = #tpu.pipeline_mode<synchronous>, transform_indices = @transform_3, window_bounds = array<i64: 4, 8, 32>}, {pipeline_mode = #tpu.pipeline_mode<synchronous>, transform_indices = @transform_4, window_bounds = array<i64: 32, 32>}, {pipeline_mode = #tpu.pipeline_mode<synchronous>, transform_indices = @transform_5, window_bounds = array<i64: 32, 64>}, {pipeline_mode = #tpu.pipeline_mode<synchronous>, transform_indices = @transform_6, window_bounds = array<i64: 4, 8, 32>}, {pipeline_mode = #tpu.pipeline_mode<synchronous>, transform_indices = @transform_7, window_bounds = array<i64: 32, 128>}, {pipeline_mode = #tpu.pipeline_mode<synchronous>, transform_indices = @transform_8, window_bounds = array<i64: 128, 32>}, {pipeline_mode = #tpu.pipeline_mode<synchronous>, transform_indices = @transform_9, window_bounds = array<i64: 16, 32>}, {pipeline_mode = #tpu.pipeline_mode<synchronous>, transform_indices = @transform_10, window_bounds = array<i64: 1, 128>}, {transform_indices = @transform_11, window_bounds = array<i64: 8, 32>}]} {
    %c0 = arith.constant 0 : index
    %c0_0 = arith.constant 0 : index
    %0 = vector.load %arg1[%c0, %c0_0] : memref<8x32xf32, #tpu.memory_space<vmem>>, vector<8x32xf32>
    %c0_1 = arith.constant 0 : index
    %c0_2 = arith.constant 0 : index
    %1 = vector.load %arg2[%c0_1, %c0_2] : memref<8x32xf32, #tpu.memory_space<vmem>>, vector<8x32xf32>
    %2 = arith.truncf %0 : vector<8x32xf32> to vector<8x32xbf16>
    %c0_3 = arith.constant 0 : index
    %c0_4 = arith.constant 0 : index
    %3 = vector.load %arg3[%c0_3, %c0_4] : memref<32x96xbf16, #tpu.memory_space<vmem>>, vector<32x96xbf16>
    %cst = arith.constant dense<0.000000e+00> : vector<8x96xf32>
    %4 = tpu.matmul %2, %3, %cst {dimension_numbers = #tpu.dot_dimension_numbers<[1], [0], [0], [1], [0, 0, 1, 1], [], []>} : vector<8x32xbf16>, vector<32x96xbf16>, vector<8x96xf32> -> vector<8x96xf32>
    %5 = vector.extract_strided_slice %4 {offsets = [0, 0], sizes = [8, 32], strides = [1, 1]} : vector<8x96xf32> to vector<8x32xf32>
    %c0_5 = arith.constant 0 : index
    %c0_6 = arith.constant 0 : index
    %6 = vector.load %arg10[%c0_5, %c0_6] : memref<16x32xf32, #tpu.memory_space<vmem>>, vector<1x32xf32>
    %7 = vector.broadcast %6 : vector<1x32xf32> to vector<8x32xf32>
    %8 = arith.addf %5, %7 : vector<8x32xf32>
    %cst_7 = arith.constant 0.353553385 : f32
    %9 = vector.broadcast %cst_7 : f32 to vector<8x32xf32>
    %10 = arith.mulf %8, %9 : vector<8x32xf32>
    %11 = vector.extract_strided_slice %4 {offsets = [0, 32], sizes = [8, 32], strides = [1, 1]} : vector<8x96xf32> to vector<8x32xf32>
    %c1 = arith.constant 1 : index
    %c0_8 = arith.constant 0 : index
    %12 = vector.load %arg10[%c1, %c0_8] : memref<16x32xf32, #tpu.memory_space<vmem>>, vector<1x32xf32>
    %13 = vector.broadcast %12 : vector<1x32xf32> to vector<8x32xf32>
    %14 = arith.addf %11, %13 : vector<8x32xf32>
    %15 = vector.extract_strided_slice %4 {offsets = [0, 64], sizes = [8, 32], strides = [1, 1]} : vector<8x96xf32> to vector<8x32xf32>
    %c2 = arith.constant 2 : index
    %c0_9 = arith.constant 0 : index
    %16 = vector.load %arg10[%c2, %c0_9] : memref<16x32xf32, #tpu.memory_space<vmem>>, vector<1x32xf32>
    %17 = vector.broadcast %16 : vector<1x32xf32> to vector<8x32xf32>
    %18 = arith.addf %15, %17 : vector<8x32xf32>
    %19 = vector.shape_cast %10 : vector<8x32xf32> to vector<1x8x32xf32>
    %20 = arith.truncf %19 : vector<1x8x32xf32> to vector<1x8x32xbf16>
    %21 = vector.shape_cast %14 : vector<8x32xf32> to vector<1x8x32xf32>
    %22 = arith.truncf %21 : vector<1x8x32xf32> to vector<1x8x32xbf16>
    %23 = vector.shape_cast %18 : vector<8x32xf32> to vector<1x8x32xf32>
    %24 = arith.truncf %23 : vector<1x8x32xf32> to vector<1x8x32xbf16>
    %cst_10 = arith.constant 0.000000e+00 : f32
    %25 = vector.broadcast %cst_10 : f32 to vector<8x32xf32>
    %26 = vector.extract_strided_slice %20 {offsets = [0, 0, 0], sizes = [1, 8, 8], strides = [1, 1, 1]} : vector<1x8x32xbf16> to vector<1x8x8xbf16>
    %27 = vector.extract_strided_slice %22 {offsets = [0, 0, 0], sizes = [1, 8, 8], strides = [1, 1, 1]} : vector<1x8x32xbf16> to vector<1x8x8xbf16>
    "tpu.trace_start"() <{level = 10 : i32, message = "bqd,bkd->bqk"}> : () -> ()
    %cst_11 = arith.constant dense<0.000000e+00> : vector<1x8x8xf32>
    %28 = tpu.matmul %26, %27, %cst_11 {dimension_numbers = #tpu.dot_dimension_numbers<[2], [2], [1], [1], [0, 0, 0, 1, 1, 1], [0], [0]>} : vector<1x8x8xbf16>, vector<1x8x8xbf16>, vector<1x8x8xf32> -> vector<1x8x8xf32>
    "tpu.trace_stop"() : () -> ()
    %cst_12 = arith.constant dense<0xFF800000> : vector<1x8xf32>
    %29 = vector.multi_reduction <maximumf>, %28, %cst_12 [2] : vector<1x8x8xf32> to vector<1x8xf32>
    %30 = vector.shape_cast %29 : vector<1x8xf32> to vector<1x8x1xf32>
    %31 = vector.broadcast %30 : vector<1x8x1xf32> to vector<1x8x8xf32>
    %32 = arith.subf %28, %31 : vector<1x8x8xf32>
    %33 = math.exp %32 : vector<1x8x8xf32>
    %cst_13 = arith.constant dense<0.000000e+00> : vector<1x8xf32>
    %34 = vector.multi_reduction <add>, %33, %cst_13 [2] : vector<1x8x8xf32> to vector<1x8xf32>
    %35 = vector.shape_cast %34 : vector<1x8xf32> to vector<1x8x1xf32>
    %36 = tpu.reciprocal %35 {approx = true} : vector<1x8x1xf32> -> vector<1x8x1xf32>
    %37 = vector.broadcast %36 : vector<1x8x1xf32> to vector<1x8x8xf32>
    %38 = arith.mulf %33, %37 : vector<1x8x8xf32>
    %39 = arith.truncf %38 : vector<1x8x8xf32> to vector<1x8x8xbf16>
    %40 = vector.extract_strided_slice %24 {offsets = [0, 0, 0], sizes = [1, 8, 8], strides = [1, 1, 1]} : vector<1x8x32xbf16> to vector<1x8x8xbf16>
    "tpu.trace_start"() <{level = 10 : i32, message = "bqk,bkd->bqd"}> : () -> ()
    %cst_14 = arith.constant dense<0.000000e+00> : vector<1x8x8xf32>
    %41 = tpu.matmul %39, %40, %cst_14 {dimension_numbers = #tpu.dot_dimension_numbers<[2], [1], [1], [2], [0, 0, 0, 1, 1, 2], [0], [0]>} : vector<1x8x8xbf16>, vector<1x8x8xbf16>, vector<1x8x8xf32> -> vector<1x8x8xf32>
    "tpu.trace_stop"() : () -> ()
    %42 = vector.shape_cast %41 : vector<1x8x8xf32> to vector<8x8xf32>
    %43 = arith.truncf %42 : vector<8x8xf32> to vector<8x8xbf16>
    %c0_15 = arith.constant 0 : index
    %c0_16 = arith.constant 0 : index
    %c0_17 = arith.constant 0 : index
    %44 = vector.load %arg4[%c0_15, %c0_16, %c0_17] : memref<4x8x32xbf16, #tpu.memory_space<vmem>>, vector<1x8x32xbf16>
    %45 = vector.shape_cast %44 : vector<1x8x32xbf16> to vector<8x32xbf16>
    %cst_18 = arith.constant dense<0.000000e+00> : vector<8x32xf32>
    %46 = tpu.matmul %43, %45, %cst_18 {dimension_numbers = #tpu.dot_dimension_numbers<[1], [0], [0], [1], [0, 0, 1, 1], [], []>} : vector<8x8xbf16>, vector<8x32xbf16>, vector<8x32xf32> -> vector<8x32xf32>
    %47 = arith.addf %25, %46 : vector<8x32xf32>
    %48 = vector.extract_strided_slice %20 {offsets = [0, 0, 8], sizes = [1, 8, 8], strides = [1, 1, 1]} : vector<1x8x32xbf16> to vector<1x8x8xbf16>
    %49 = vector.extract_strided_slice %22 {offsets = [0, 0, 8], sizes = [1, 8, 8], strides = [1, 1, 1]} : vector<1x8x32xbf16> to vector<1x8x8xbf16>
    "tpu.trace_start"() <{level = 10 : i32, message = "bqd,bkd->bqk"}> : () -> ()
    %cst_19 = arith.constant dense<0.000000e+00> : vector<1x8x8xf32>
    %50 = tpu.matmul %48, %49, %cst_19 {dimension_numbers = #tpu.dot_dimension_numbers<[2], [2], [1], [1], [0, 0, 0, 1, 1, 1], [0], [0]>} : vector<1x8x8xbf16>, vector<1x8x8xbf16>, vector<1x8x8xf32> -> vector<1x8x8xf32>
    "tpu.trace_stop"() : () -> ()
    %cst_20 = arith.constant dense<0xFF800000> : vector<1x8xf32>
    %51 = vector.multi_reduction <maximumf>, %50, %cst_20 [2] : vector<1x8x8xf32> to vector<1x8xf32>
    %52 = vector.shape_cast %51 : vector<1x8xf32> to vector<1x8x1xf32>
    %53 = vector.broadcast %52 : vector<1x8x1xf32> to vector<1x8x8xf32>
    %54 = arith.subf %50, %53 : vector<1x8x8xf32>
    %55 = math.exp %54 : vector<1x8x8xf32>
    %cst_21 = arith.constant dense<0.000000e+00> : vector<1x8xf32>
    %56 = vector.multi_reduction <add>, %55, %cst_21 [2] : vector<1x8x8xf32> to vector<1x8xf32>
    %57 = vector.shape_cast %56 : vector<1x8xf32> to vector<1x8x1xf32>
    %58 = tpu.reciprocal %57 {approx = true} : vector<1x8x1xf32> -> vector<1x8x1xf32>
    %59 = vector.broadcast %58 : vector<1x8x1xf32> to vector<1x8x8xf32>
    %60 = arith.mulf %55, %59 : vector<1x8x8xf32>
    %61 = arith.truncf %60 : vector<1x8x8xf32> to vector<1x8x8xbf16>
    %62 = vector.extract_strided_slice %24 {offsets = [0, 0, 8], sizes = [1, 8, 8], strides = [1, 1, 1]} : vector<1x8x32xbf16> to vector<1x8x8xbf16>
    "tpu.trace_start"() <{level = 10 : i32, message = "bqk,bkd->bqd"}> : () -> ()
    %cst_22 = arith.constant dense<0.000000e+00> : vector<1x8x8xf32>
    %63 = tpu.matmul %61, %62, %cst_22 {dimension_numbers = #tpu.dot_dimension_numbers<[2], [1], [1], [2], [0, 0, 0, 1, 1, 2], [0], [0]>} : vector<1x8x8xbf16>, vector<1x8x8xbf16>, vector<1x8x8xf32> -> vector<1x8x8xf32>
    "tpu.trace_stop"() : () -> ()
    %64 = vector.shape_cast %63 : vector<1x8x8xf32> to vector<8x8xf32>
    %65 = arith.truncf %64 : vector<8x8xf32> to vector<8x8xbf16>
    %c1_23 = arith.constant 1 : index
    %c0_24 = arith.constant 0 : index
    %c0_25 = arith.constant 0 : index
    %66 = vector.load %arg4[%c1_23, %c0_24, %c0_25] : memref<4x8x32xbf16, #tpu.memory_space<vmem>>, vector<1x8x32xbf16>
    %67 = vector.shape_cast %66 : vector<1x8x32xbf16> to vector<8x32xbf16>
    %cst_26 = arith.constant dense<0.000000e+00> : vector<8x32xf32>
    %68 = tpu.matmul %65, %67, %cst_26 {dimension_numbers = #tpu.dot_dimension_numbers<[1], [0], [0], [1], [0, 0, 1, 1], [], []>} : vector<8x8xbf16>, vector<8x32xbf16>, vector<8x32xf32> -> vector<8x32xf32>
    %69 = arith.addf %47, %68 : vector<8x32xf32>
    %70 = vector.extract_strided_slice %20 {offsets = [0, 0, 16], sizes = [1, 8, 8], strides = [1, 1, 1]} : vector<1x8x32xbf16> to vector<1x8x8xbf16>
    %71 = vector.extract_strided_slice %22 {offsets = [0, 0, 16], sizes = [1, 8, 8], strides = [1, 1, 1]} : vector<1x8x32xbf16> to vector<1x8x8xbf16>
    "tpu.trace_start"() <{level = 10 : i32, message = "bqd,bkd->bqk"}> : () -> ()
    %cst_27 = arith.constant dense<0.000000e+00> : vector<1x8x8xf32>
    %72 = tpu.matmul %70, %71, %cst_27 {dimension_numbers = #tpu.dot_dimension_numbers<[2], [2], [1], [1], [0, 0, 0, 1, 1, 1], [0], [0]>} : vector<1x8x8xbf16>, vector<1x8x8xbf16>, vector<1x8x8xf32> -> vector<1x8x8xf32>
    "tpu.trace_stop"() : () -> ()
    %cst_28 = arith.constant dense<0xFF800000> : vector<1x8xf32>
    %73 = vector.multi_reduction <maximumf>, %72, %cst_28 [2] : vector<1x8x8xf32> to vector<1x8xf32>
    %74 = vector.shape_cast %73 : vector<1x8xf32> to vector<1x8x1xf32>
    %75 = vector.broadcast %74 : vector<1x8x1xf32> to vector<1x8x8xf32>
    %76 = arith.subf %72, %75 : vector<1x8x8xf32>
    %77 = math.exp %76 : vector<1x8x8xf32>
    %cst_29 = arith.constant dense<0.000000e+00> : vector<1x8xf32>
    %78 = vector.multi_reduction <add>, %77, %cst_29 [2] : vector<1x8x8xf32> to vector<1x8xf32>
    %79 = vector.shape_cast %78 : vector<1x8xf32> to vector<1x8x1xf32>
    %80 = tpu.reciprocal %79 {approx = true} : vector<1x8x1xf32> -> vector<1x8x1xf32>
    %81 = vector.broadcast %80 : vector<1x8x1xf32> to vector<1x8x8xf32>
    %82 = arith.mulf %77, %81 : vector<1x8x8xf32>
    %83 = arith.truncf %82 : vector<1x8x8xf32> to vector<1x8x8xbf16>
    %84 = vector.extract_strided_slice %24 {offsets = [0, 0, 16], sizes = [1, 8, 8], strides = [1, 1, 1]} : vector<1x8x32xbf16> to vector<1x8x8xbf16>
    "tpu.trace_start"() <{level = 10 : i32, message = "bqk,bkd->bqd"}> : () -> ()
    %cst_30 = arith.constant dense<0.000000e+00> : vector<1x8x8xf32>
    %85 = tpu.matmul %83, %84, %cst_30 {dimension_numbers = #tpu.dot_dimension_numbers<[2], [1], [1], [2], [0, 0, 0, 1, 1, 2], [0], [0]>} : vector<1x8x8xbf16>, vector<1x8x8xbf16>, vector<1x8x8xf32> -> vector<1x8x8xf32>
    "tpu.trace_stop"() : () -> ()
    %86 = vector.shape_cast %85 : vector<1x8x8xf32> to vector<8x8xf32>
    %87 = arith.truncf %86 : vector<8x8xf32> to vector<8x8xbf16>
    %c2_31 = arith.constant 2 : index
    %c0_32 = arith.constant 0 : index
    %c0_33 = arith.constant 0 : index
    %88 = vector.load %arg4[%c2_31, %c0_32, %c0_33] : memref<4x8x32xbf16, #tpu.memory_space<vmem>>, vector<1x8x32xbf16>
    %89 = vector.shape_cast %88 : vector<1x8x32xbf16> to vector<8x32xbf16>
    %cst_34 = arith.constant dense<0.000000e+00> : vector<8x32xf32>
    %90 = tpu.matmul %87, %89, %cst_34 {dimension_numbers = #tpu.dot_dimension_numbers<[1], [0], [0], [1], [0, 0, 1, 1], [], []>} : vector<8x8xbf16>, vector<8x32xbf16>, vector<8x32xf32> -> vector<8x32xf32>
    %91 = arith.addf %69, %90 : vector<8x32xf32>
    %92 = vector.extract_strided_slice %20 {offsets = [0, 0, 24], sizes = [1, 8, 8], strides = [1, 1, 1]} : vector<1x8x32xbf16> to vector<1x8x8xbf16>
    %93 = vector.extract_strided_slice %22 {offsets = [0, 0, 24], sizes = [1, 8, 8], strides = [1, 1, 1]} : vector<1x8x32xbf16> to vector<1x8x8xbf16>
    "tpu.trace_start"() <{level = 10 : i32, message = "bqd,bkd->bqk"}> : () -> ()
    %cst_35 = arith.constant dense<0.000000e+00> : vector<1x8x8xf32>
    %94 = tpu.matmul %92, %93, %cst_35 {dimension_numbers = #tpu.dot_dimension_numbers<[2], [2], [1], [1], [0, 0, 0, 1, 1, 1], [0], [0]>} : vector<1x8x8xbf16>, vector<1x8x8xbf16>, vector<1x8x8xf32> -> vector<1x8x8xf32>
    "tpu.trace_stop"() : () -> ()
    %cst_36 = arith.constant dense<0xFF800000> : vector<1x8xf32>
    %95 = vector.multi_reduction <maximumf>, %94, %cst_36 [2] : vector<1x8x8xf32> to vector<1x8xf32>
    %96 = vector.shape_cast %95 : vector<1x8xf32> to vector<1x8x1xf32>
    %97 = vector.broadcast %96 : vector<1x8x1xf32> to vector<1x8x8xf32>
    %98 = arith.subf %94, %97 : vector<1x8x8xf32>
    %99 = math.exp %98 : vector<1x8x8xf32>
    %cst_37 = arith.constant dense<0.000000e+00> : vector<1x8xf32>
    %100 = vector.multi_reduction <add>, %99, %cst_37 [2] : vector<1x8x8xf32> to vector<1x8xf32>
    %101 = vector.shape_cast %100 : vector<1x8xf32> to vector<1x8x1xf32>
    %102 = tpu.reciprocal %101 {approx = true} : vector<1x8x1xf32> -> vector<1x8x1xf32>
    %103 = vector.broadcast %102 : vector<1x8x1xf32> to vector<1x8x8xf32>
    %104 = arith.mulf %99, %103 : vector<1x8x8xf32>
    %105 = arith.truncf %104 : vector<1x8x8xf32> to vector<1x8x8xbf16>
    %106 = vector.extract_strided_slice %24 {offsets = [0, 0, 24], sizes = [1, 8, 8], strides = [1, 1, 1]} : vector<1x8x32xbf16> to vector<1x8x8xbf16>
    "tpu.trace_start"() <{level = 10 : i32, message = "bqk,bkd->bqd"}> : () -> ()
    %cst_38 = arith.constant dense<0.000000e+00> : vector<1x8x8xf32>
    %107 = tpu.matmul %105, %106, %cst_38 {dimension_numbers = #tpu.dot_dimension_numbers<[2], [1], [1], [2], [0, 0, 0, 1, 1, 2], [0], [0]>} : vector<1x8x8xbf16>, vector<1x8x8xbf16>, vector<1x8x8xf32> -> vector<1x8x8xf32>
    "tpu.trace_stop"() : () -> ()
    %108 = vector.shape_cast %107 : vector<1x8x8xf32> to vector<8x8xf32>
    %109 = arith.truncf %108 : vector<8x8xf32> to vector<8x8xbf16>
    %c3 = arith.constant 3 : index
    %c0_39 = arith.constant 0 : index
    %c0_40 = arith.constant 0 : index
    %110 = vector.load %arg4[%c3, %c0_39, %c0_40] : memref<4x8x32xbf16, #tpu.memory_space<vmem>>, vector<1x8x32xbf16>
    %111 = vector.shape_cast %110 : vector<1x8x32xbf16> to vector<8x32xbf16>
    %cst_41 = arith.constant dense<0.000000e+00> : vector<8x32xf32>
    %112 = tpu.matmul %109, %111, %cst_41 {dimension_numbers = #tpu.dot_dimension_numbers<[1], [0], [0], [1], [0, 0, 1, 1], [], []>} : vector<8x8xbf16>, vector<8x32xbf16>, vector<8x32xf32> -> vector<8x32xf32>
    %113 = arith.addf %91, %112 : vector<8x32xf32>
    %c3_42 = arith.constant 3 : index
    %c0_43 = arith.constant 0 : index
    %114 = vector.load %arg10[%c3_42, %c0_43] : memref<16x32xf32, #tpu.memory_space<vmem>>, vector<1x32xf32>
    %115 = vector.broadcast %114 : vector<1x32xf32> to vector<8x32xf32>
    %116 = arith.addf %113, %115 : vector<8x32xf32>
    %117 = arith.addf %0, %116 : vector<8x32xf32>
    %c4 = arith.constant 4 : index
    %c0_44 = arith.constant 0 : index
    %118 = vector.load %arg10[%c4, %c0_44] : memref<16x32xf32, #tpu.memory_space<vmem>>, vector<1x32xf32>
    %c5 = arith.constant 5 : index
    %c0_45 = arith.constant 0 : index
    %119 = vector.load %arg10[%c5, %c0_45] : memref<16x32xf32, #tpu.memory_space<vmem>>, vector<1x32xf32>
    %cst_46 = arith.constant dense<0.000000e+00> : vector<8xf32>
    %120 = vector.multi_reduction <add>, %117, %cst_46 [1] : vector<8x32xf32> to vector<8xf32>
    %121 = vector.shape_cast %120 : vector<8xf32> to vector<8x1xf32>
    %cst_47 = arith.constant 3.200000e+01 : f32
    %122 = vector.broadcast %cst_47 : f32 to vector<8x1xf32>
    %123 = arith.divf %121, %122 : vector<8x1xf32>
    %124 = vector.broadcast %123 : vector<8x1xf32> to vector<8x32xf32>
    %125 = arith.subf %117, %124 : vector<8x32xf32>
    %126 = arith.mulf %125, %125 : vector<8x32xf32>
    %cst_48 = arith.constant dense<0.000000e+00> : vector<8xf32>
    %127 = vector.multi_reduction <add>, %126, %cst_48 [1] : vector<8x32xf32> to vector<8xf32>
    %128 = vector.shape_cast %127 : vector<8xf32> to vector<8x1xf32>
    %cst_49 = arith.constant 3.200000e+01 : f32
    %129 = vector.broadcast %cst_49 : f32 to vector<8x1xf32>
    %130 = arith.divf %128, %129 : vector<8x1xf32>
    %131 = vector.broadcast %123 : vector<8x1xf32> to vector<8x32xf32>
    %132 = arith.subf %117, %131 : vector<8x32xf32>
    %cst_50 = arith.constant 9.99999974E-6 : f32
    %133 = vector.broadcast %cst_50 : f32 to vector<8x1xf32>
    %134 = arith.addf %130, %133 : vector<8x1xf32>
    %135 = math.rsqrt %134 : vector<8x1xf32>
    %136 = vector.broadcast %135 : vector<8x1xf32> to vector<8x32xf32>
    %137 = arith.mulf %132, %136 : vector<8x32xf32>
    %138 = vector.broadcast %118 : vector<1x32xf32> to vector<8x32xf32>
    %139 = arith.mulf %137, %138 : vector<8x32xf32>
    %140 = vector.broadcast %119 : vector<1x32xf32> to vector<8x32xf32>
    %141 = arith.addf %139, %140 : vector<8x32xf32>
    %142 = arith.truncf %141 : vector<8x32xf32> to vector<8x32xbf16>
    %c0_51 = arith.constant 0 : index
    %c0_52 = arith.constant 0 : index
    %143 = vector.load %arg5[%c0_51, %c0_52] : memref<32x32xbf16, #tpu.memory_space<vmem>>, vector<32x32xbf16>
    %cst_53 = arith.constant dense<0.000000e+00> : vector<8x32xf32>
    %144 = tpu.matmul %142, %143, %cst_53 {dimension_numbers = #tpu.dot_dimension_numbers<[1], [0], [0], [1], [0, 0, 1, 1], [], []>} : vector<8x32xbf16>, vector<32x32xbf16>, vector<8x32xf32> -> vector<8x32xf32>
    %c6 = arith.constant 6 : index
    %c0_54 = arith.constant 0 : index
    %145 = vector.load %arg10[%c6, %c0_54] : memref<16x32xf32, #tpu.memory_space<vmem>>, vector<1x32xf32>
    %146 = vector.broadcast %145 : vector<1x32xf32> to vector<8x32xf32>
    %147 = arith.addf %144, %146 : vector<8x32xf32>
    %cst_55 = arith.constant 0.353553385 : f32
    %148 = vector.broadcast %cst_55 : f32 to vector<8x32xf32>
    %149 = arith.mulf %147, %148 : vector<8x32xf32>
    %150 = arith.truncf %1 : vector<8x32xf32> to vector<8x32xbf16>
    %c0_56 = arith.constant 0 : index
    %c0_57 = arith.constant 0 : index
    %151 = vector.load %arg6[%c0_56, %c0_57] : memref<32x64xbf16, #tpu.memory_space<vmem>>, vector<32x64xbf16>
    %cst_58 = arith.constant dense<0.000000e+00> : vector<8x64xf32>
    %152 = tpu.matmul %150, %151, %cst_58 {dimension_numbers = #tpu.dot_dimension_numbers<[1], [0], [0], [1], [0, 0, 1, 1], [], []>} : vector<8x32xbf16>, vector<32x64xbf16>, vector<8x64xf32> -> vector<8x64xf32>
    %153 = vector.extract_strided_slice %152 {offsets = [0, 0], sizes = [8, 32], strides = [1, 1]} : vector<8x64xf32> to vector<8x32xf32>
    %c7 = arith.constant 7 : index
    %c0_59 = arith.constant 0 : index
    %154 = vector.load %arg10[%c7, %c0_59] : memref<16x32xf32, #tpu.memory_space<vmem>>, vector<1x32xf32>
    %155 = vector.broadcast %154 : vector<1x32xf32> to vector<8x32xf32>
    %156 = arith.addf %153, %155 : vector<8x32xf32>
    %157 = vector.extract_strided_slice %152 {offsets = [0, 32], sizes = [8, 32], strides = [1, 1]} : vector<8x64xf32> to vector<8x32xf32>
    %c8 = arith.constant 8 : index
    %c0_60 = arith.constant 0 : index
    %158 = vector.load %arg10[%c8, %c0_60] : memref<16x32xf32, #tpu.memory_space<vmem>>, vector<1x32xf32>
    %159 = vector.broadcast %158 : vector<1x32xf32> to vector<8x32xf32>
    %160 = arith.addf %157, %159 : vector<8x32xf32>
    %161 = vector.shape_cast %149 : vector<8x32xf32> to vector<1x8x32xf32>
    %162 = arith.truncf %161 : vector<1x8x32xf32> to vector<1x8x32xbf16>
    %163 = vector.shape_cast %156 : vector<8x32xf32> to vector<1x8x32xf32>
    %164 = arith.truncf %163 : vector<1x8x32xf32> to vector<1x8x32xbf16>
    %165 = vector.shape_cast %160 : vector<8x32xf32> to vector<1x8x32xf32>
    %166 = arith.truncf %165 : vector<1x8x32xf32> to vector<1x8x32xbf16>
    %cst_61 = arith.constant 0.000000e+00 : f32
    %167 = vector.broadcast %cst_61 : f32 to vector<8x32xf32>
    %168 = vector.extract_strided_slice %162 {offsets = [0, 0, 0], sizes = [1, 8, 8], strides = [1, 1, 1]} : vector<1x8x32xbf16> to vector<1x8x8xbf16>
    %169 = vector.extract_strided_slice %164 {offsets = [0, 0, 0], sizes = [1, 8, 8], strides = [1, 1, 1]} : vector<1x8x32xbf16> to vector<1x8x8xbf16>
    "tpu.trace_start"() <{level = 10 : i32, message = "bqd,bkd->bqk"}> : () -> ()
    %cst_62 = arith.constant dense<0.000000e+00> : vector<1x8x8xf32>
    %170 = tpu.matmul %168, %169, %cst_62 {dimension_numbers = #tpu.dot_dimension_numbers<[2], [2], [1], [1], [0, 0, 0, 1, 1, 1], [0], [0]>} : vector<1x8x8xbf16>, vector<1x8x8xbf16>, vector<1x8x8xf32> -> vector<1x8x8xf32>
    "tpu.trace_stop"() : () -> ()
    %cst_63 = arith.constant dense<0xFF800000> : vector<1x8xf32>
    %171 = vector.multi_reduction <maximumf>, %170, %cst_63 [2] : vector<1x8x8xf32> to vector<1x8xf32>
    %172 = vector.shape_cast %171 : vector<1x8xf32> to vector<1x8x1xf32>
    %173 = vector.broadcast %172 : vector<1x8x1xf32> to vector<1x8x8xf32>
    %174 = arith.subf %170, %173 : vector<1x8x8xf32>
    %175 = math.exp %174 : vector<1x8x8xf32>
    %cst_64 = arith.constant dense<0.000000e+00> : vector<1x8xf32>
    %176 = vector.multi_reduction <add>, %175, %cst_64 [2] : vector<1x8x8xf32> to vector<1x8xf32>
    %177 = vector.shape_cast %176 : vector<1x8xf32> to vector<1x8x1xf32>
    %178 = tpu.reciprocal %177 {approx = true} : vector<1x8x1xf32> -> vector<1x8x1xf32>
    %179 = vector.broadcast %178 : vector<1x8x1xf32> to vector<1x8x8xf32>
    %180 = arith.mulf %175, %179 : vector<1x8x8xf32>
    %181 = arith.truncf %180 : vector<1x8x8xf32> to vector<1x8x8xbf16>
    %182 = vector.extract_strided_slice %166 {offsets = [0, 0, 0], sizes = [1, 8, 8], strides = [1, 1, 1]} : vector<1x8x32xbf16> to vector<1x8x8xbf16>
    "tpu.trace_start"() <{level = 10 : i32, message = "bqk,bkd->bqd"}> : () -> ()
    %cst_65 = arith.constant dense<0.000000e+00> : vector<1x8x8xf32>
    %183 = tpu.matmul %181, %182, %cst_65 {dimension_numbers = #tpu.dot_dimension_numbers<[2], [1], [1], [2], [0, 0, 0, 1, 1, 2], [0], [0]>} : vector<1x8x8xbf16>, vector<1x8x8xbf16>, vector<1x8x8xf32> -> vector<1x8x8xf32>
    "tpu.trace_stop"() : () -> ()
    %184 = vector.shape_cast %183 : vector<1x8x8xf32> to vector<8x8xf32>
    %185 = arith.truncf %184 : vector<8x8xf32> to vector<8x8xbf16>
    %c0_66 = arith.constant 0 : index
    %c0_67 = arith.constant 0 : index
    %c0_68 = arith.constant 0 : index
    %186 = vector.load %arg7[%c0_66, %c0_67, %c0_68] : memref<4x8x32xbf16, #tpu.memory_space<vmem>>, vector<1x8x32xbf16>
    %187 = vector.shape_cast %186 : vector<1x8x32xbf16> to vector<8x32xbf16>
    %cst_69 = arith.constant dense<0.000000e+00> : vector<8x32xf32>
    %188 = tpu.matmul %185, %187, %cst_69 {dimension_numbers = #tpu.dot_dimension_numbers<[1], [0], [0], [1], [0, 0, 1, 1], [], []>} : vector<8x8xbf16>, vector<8x32xbf16>, vector<8x32xf32> -> vector<8x32xf32>
    %189 = arith.addf %167, %188 : vector<8x32xf32>
    %190 = vector.extract_strided_slice %162 {offsets = [0, 0, 8], sizes = [1, 8, 8], strides = [1, 1, 1]} : vector<1x8x32xbf16> to vector<1x8x8xbf16>
    %191 = vector.extract_strided_slice %164 {offsets = [0, 0, 8], sizes = [1, 8, 8], strides = [1, 1, 1]} : vector<1x8x32xbf16> to vector<1x8x8xbf16>
    "tpu.trace_start"() <{level = 10 : i32, message = "bqd,bkd->bqk"}> : () -> ()
    %cst_70 = arith.constant dense<0.000000e+00> : vector<1x8x8xf32>
    %192 = tpu.matmul %190, %191, %cst_70 {dimension_numbers = #tpu.dot_dimension_numbers<[2], [2], [1], [1], [0, 0, 0, 1, 1, 1], [0], [0]>} : vector<1x8x8xbf16>, vector<1x8x8xbf16>, vector<1x8x8xf32> -> vector<1x8x8xf32>
    "tpu.trace_stop"() : () -> ()
    %cst_71 = arith.constant dense<0xFF800000> : vector<1x8xf32>
    %193 = vector.multi_reduction <maximumf>, %192, %cst_71 [2] : vector<1x8x8xf32> to vector<1x8xf32>
    %194 = vector.shape_cast %193 : vector<1x8xf32> to vector<1x8x1xf32>
    %195 = vector.broadcast %194 : vector<1x8x1xf32> to vector<1x8x8xf32>
    %196 = arith.subf %192, %195 : vector<1x8x8xf32>
    %197 = math.exp %196 : vector<1x8x8xf32>
    %cst_72 = arith.constant dense<0.000000e+00> : vector<1x8xf32>
    %198 = vector.multi_reduction <add>, %197, %cst_72 [2] : vector<1x8x8xf32> to vector<1x8xf32>
    %199 = vector.shape_cast %198 : vector<1x8xf32> to vector<1x8x1xf32>
    %200 = tpu.reciprocal %199 {approx = true} : vector<1x8x1xf32> -> vector<1x8x1xf32>
    %201 = vector.broadcast %200 : vector<1x8x1xf32> to vector<1x8x8xf32>
    %202 = arith.mulf %197, %201 : vector<1x8x8xf32>
    %203 = arith.truncf %202 : vector<1x8x8xf32> to vector<1x8x8xbf16>
    %204 = vector.extract_strided_slice %166 {offsets = [0, 0, 8], sizes = [1, 8, 8], strides = [1, 1, 1]} : vector<1x8x32xbf16> to vector<1x8x8xbf16>
    "tpu.trace_start"() <{level = 10 : i32, message = "bqk,bkd->bqd"}> : () -> ()
    %cst_73 = arith.constant dense<0.000000e+00> : vector<1x8x8xf32>
    %205 = tpu.matmul %203, %204, %cst_73 {dimension_numbers = #tpu.dot_dimension_numbers<[2], [1], [1], [2], [0, 0, 0, 1, 1, 2], [0], [0]>} : vector<1x8x8xbf16>, vector<1x8x8xbf16>, vector<1x8x8xf32> -> vector<1x8x8xf32>
    "tpu.trace_stop"() : () -> ()
    %206 = vector.shape_cast %205 : vector<1x8x8xf32> to vector<8x8xf32>
    %207 = arith.truncf %206 : vector<8x8xf32> to vector<8x8xbf16>
    %c1_74 = arith.constant 1 : index
    %c0_75 = arith.constant 0 : index
    %c0_76 = arith.constant 0 : index
    %208 = vector.load %arg7[%c1_74, %c0_75, %c0_76] : memref<4x8x32xbf16, #tpu.memory_space<vmem>>, vector<1x8x32xbf16>
    %209 = vector.shape_cast %208 : vector<1x8x32xbf16> to vector<8x32xbf16>
    %cst_77 = arith.constant dense<0.000000e+00> : vector<8x32xf32>
    %210 = tpu.matmul %207, %209, %cst_77 {dimension_numbers = #tpu.dot_dimension_numbers<[1], [0], [0], [1], [0, 0, 1, 1], [], []>} : vector<8x8xbf16>, vector<8x32xbf16>, vector<8x32xf32> -> vector<8x32xf32>
    %211 = arith.addf %189, %210 : vector<8x32xf32>
    %212 = vector.extract_strided_slice %162 {offsets = [0, 0, 16], sizes = [1, 8, 8], strides = [1, 1, 1]} : vector<1x8x32xbf16> to vector<1x8x8xbf16>
    %213 = vector.extract_strided_slice %164 {offsets = [0, 0, 16], sizes = [1, 8, 8], strides = [1, 1, 1]} : vector<1x8x32xbf16> to vector<1x8x8xbf16>
    "tpu.trace_start"() <{level = 10 : i32, message = "bqd,bkd->bqk"}> : () -> ()
    %cst_78 = arith.constant dense<0.000000e+00> : vector<1x8x8xf32>
    %214 = tpu.matmul %212, %213, %cst_78 {dimension_numbers = #tpu.dot_dimension_numbers<[2], [2], [1], [1], [0, 0, 0, 1, 1, 1], [0], [0]>} : vector<1x8x8xbf16>, vector<1x8x8xbf16>, vector<1x8x8xf32> -> vector<1x8x8xf32>
    "tpu.trace_stop"() : () -> ()
    %cst_79 = arith.constant dense<0xFF800000> : vector<1x8xf32>
    %215 = vector.multi_reduction <maximumf>, %214, %cst_79 [2] : vector<1x8x8xf32> to vector<1x8xf32>
    %216 = vector.shape_cast %215 : vector<1x8xf32> to vector<1x8x1xf32>
    %217 = vector.broadcast %216 : vector<1x8x1xf32> to vector<1x8x8xf32>
    %218 = arith.subf %214, %217 : vector<1x8x8xf32>
    %219 = math.exp %218 : vector<1x8x8xf32>
    %cst_80 = arith.constant dense<0.000000e+00> : vector<1x8xf32>
    %220 = vector.multi_reduction <add>, %219, %cst_80 [2] : vector<1x8x8xf32> to vector<1x8xf32>
    %221 = vector.shape_cast %220 : vector<1x8xf32> to vector<1x8x1xf32>
    %222 = tpu.reciprocal %221 {approx = true} : vector<1x8x1xf32> -> vector<1x8x1xf32>
    %223 = vector.broadcast %222 : vector<1x8x1xf32> to vector<1x8x8xf32>
    %224 = arith.mulf %219, %223 : vector<1x8x8xf32>
    %225 = arith.truncf %224 : vector<1x8x8xf32> to vector<1x8x8xbf16>
    %226 = vector.extract_strided_slice %166 {offsets = [0, 0, 16], sizes = [1, 8, 8], strides = [1, 1, 1]} : vector<1x8x32xbf16> to vector<1x8x8xbf16>
    "tpu.trace_start"() <{level = 10 : i32, message = "bqk,bkd->bqd"}> : () -> ()
    %cst_81 = arith.constant dense<0.000000e+00> : vector<1x8x8xf32>
    %227 = tpu.matmul %225, %226, %cst_81 {dimension_numbers = #tpu.dot_dimension_numbers<[2], [1], [1], [2], [0, 0, 0, 1, 1, 2], [0], [0]>} : vector<1x8x8xbf16>, vector<1x8x8xbf16>, vector<1x8x8xf32> -> vector<1x8x8xf32>
    "tpu.trace_stop"() : () -> ()
    %228 = vector.shape_cast %227 : vector<1x8x8xf32> to vector<8x8xf32>
    %229 = arith.truncf %228 : vector<8x8xf32> to vector<8x8xbf16>
    %c2_82 = arith.constant 2 : index
    %c0_83 = arith.constant 0 : index
    %c0_84 = arith.constant 0 : index
    %230 = vector.load %arg7[%c2_82, %c0_83, %c0_84] : memref<4x8x32xbf16, #tpu.memory_space<vmem>>, vector<1x8x32xbf16>
    %231 = vector.shape_cast %230 : vector<1x8x32xbf16> to vector<8x32xbf16>
    %cst_85 = arith.constant dense<0.000000e+00> : vector<8x32xf32>
    %232 = tpu.matmul %229, %231, %cst_85 {dimension_numbers = #tpu.dot_dimension_numbers<[1], [0], [0], [1], [0, 0, 1, 1], [], []>} : vector<8x8xbf16>, vector<8x32xbf16>, vector<8x32xf32> -> vector<8x32xf32>
    %233 = arith.addf %211, %232 : vector<8x32xf32>
    %234 = vector.extract_strided_slice %162 {offsets = [0, 0, 24], sizes = [1, 8, 8], strides = [1, 1, 1]} : vector<1x8x32xbf16> to vector<1x8x8xbf16>
    %235 = vector.extract_strided_slice %164 {offsets = [0, 0, 24], sizes = [1, 8, 8], strides = [1, 1, 1]} : vector<1x8x32xbf16> to vector<1x8x8xbf16>
    "tpu.trace_start"() <{level = 10 : i32, message = "bqd,bkd->bqk"}> : () -> ()
    %cst_86 = arith.constant dense<0.000000e+00> : vector<1x8x8xf32>
    %236 = tpu.matmul %234, %235, %cst_86 {dimension_numbers = #tpu.dot_dimension_numbers<[2], [2], [1], [1], [0, 0, 0, 1, 1, 1], [0], [0]>} : vector<1x8x8xbf16>, vector<1x8x8xbf16>, vector<1x8x8xf32> -> vector<1x8x8xf32>
    "tpu.trace_stop"() : () -> ()
    %cst_87 = arith.constant dense<0xFF800000> : vector<1x8xf32>
    %237 = vector.multi_reduction <maximumf>, %236, %cst_87 [2] : vector<1x8x8xf32> to vector<1x8xf32>
    %238 = vector.shape_cast %237 : vector<1x8xf32> to vector<1x8x1xf32>
    %239 = vector.broadcast %238 : vector<1x8x1xf32> to vector<1x8x8xf32>
    %240 = arith.subf %236, %239 : vector<1x8x8xf32>
    %241 = math.exp %240 : vector<1x8x8xf32>
    %cst_88 = arith.constant dense<0.000000e+00> : vector<1x8xf32>
    %242 = vector.multi_reduction <add>, %241, %cst_88 [2] : vector<1x8x8xf32> to vector<1x8xf32>
    %243 = vector.shape_cast %242 : vector<1x8xf32> to vector<1x8x1xf32>
    %244 = tpu.reciprocal %243 {approx = true} : vector<1x8x1xf32> -> vector<1x8x1xf32>
    %245 = vector.broadcast %244 : vector<1x8x1xf32> to vector<1x8x8xf32>
    %246 = arith.mulf %241, %245 : vector<1x8x8xf32>
    %247 = arith.truncf %246 : vector<1x8x8xf32> to vector<1x8x8xbf16>
    %248 = vector.extract_strided_slice %166 {offsets = [0, 0, 24], sizes = [1, 8, 8], strides = [1, 1, 1]} : vector<1x8x32xbf16> to vector<1x8x8xbf16>
    "tpu.trace_start"() <{level = 10 : i32, message = "bqk,bkd->bqd"}> : () -> ()
    %cst_89 = arith.constant dense<0.000000e+00> : vector<1x8x8xf32>
    %249 = tpu.matmul %247, %248, %cst_89 {dimension_numbers = #tpu.dot_dimension_numbers<[2], [1], [1], [2], [0, 0, 0, 1, 1, 2], [0], [0]>} : vector<1x8x8xbf16>, vector<1x8x8xbf16>, vector<1x8x8xf32> -> vector<1x8x8xf32>
    "tpu.trace_stop"() : () -> ()
    %250 = vector.shape_cast %249 : vector<1x8x8xf32> to vector<8x8xf32>
    %251 = arith.truncf %250 : vector<8x8xf32> to vector<8x8xbf16>
    %c3_90 = arith.constant 3 : index
    %c0_91 = arith.constant 0 : index
    %c0_92 = arith.constant 0 : index
    %252 = vector.load %arg7[%c3_90, %c0_91, %c0_92] : memref<4x8x32xbf16, #tpu.memory_space<vmem>>, vector<1x8x32xbf16>
    %253 = vector.shape_cast %252 : vector<1x8x32xbf16> to vector<8x32xbf16>
    %cst_93 = arith.constant dense<0.000000e+00> : vector<8x32xf32>
    %254 = tpu.matmul %251, %253, %cst_93 {dimension_numbers = #tpu.dot_dimension_numbers<[1], [0], [0], [1], [0, 0, 1, 1], [], []>} : vector<8x8xbf16>, vector<8x32xbf16>, vector<8x32xf32> -> vector<8x32xf32>
    %255 = arith.addf %233, %254 : vector<8x32xf32>
    %c9 = arith.constant 9 : index
    %c0_94 = arith.constant 0 : index
    %256 = vector.load %arg10[%c9, %c0_94] : memref<16x32xf32, #tpu.memory_space<vmem>>, vector<1x32xf32>
    %257 = vector.broadcast %256 : vector<1x32xf32> to vector<8x32xf32>
    %258 = arith.addf %255, %257 : vector<8x32xf32>
    %259 = arith.addf %141, %258 : vector<8x32xf32>
    %c10 = arith.constant 10 : index
    %c0_95 = arith.constant 0 : index
    %260 = vector.load %arg10[%c10, %c0_95] : memref<16x32xf32, #tpu.memory_space<vmem>>, vector<1x32xf32>
    %c11 = arith.constant 11 : index
    %c0_96 = arith.constant 0 : index
    %261 = vector.load %arg10[%c11, %c0_96] : memref<16x32xf32, #tpu.memory_space<vmem>>, vector<1x32xf32>
    %cst_97 = arith.constant dense<0.000000e+00> : vector<8xf32>
    %262 = vector.multi_reduction <add>, %259, %cst_97 [1] : vector<8x32xf32> to vector<8xf32>
    %263 = vector.shape_cast %262 : vector<8xf32> to vector<8x1xf32>
    %cst_98 = arith.constant 3.200000e+01 : f32
    %264 = vector.broadcast %cst_98 : f32 to vector<8x1xf32>
    %265 = arith.divf %263, %264 : vector<8x1xf32>
    %266 = vector.broadcast %265 : vector<8x1xf32> to vector<8x32xf32>
    %267 = arith.subf %259, %266 : vector<8x32xf32>
    %268 = arith.mulf %267, %267 : vector<8x32xf32>
    %cst_99 = arith.constant dense<0.000000e+00> : vector<8xf32>
    %269 = vector.multi_reduction <add>, %268, %cst_99 [1] : vector<8x32xf32> to vector<8xf32>
    %270 = vector.shape_cast %269 : vector<8xf32> to vector<8x1xf32>
    %cst_100 = arith.constant 3.200000e+01 : f32
    %271 = vector.broadcast %cst_100 : f32 to vector<8x1xf32>
    %272 = arith.divf %270, %271 : vector<8x1xf32>
    %273 = vector.broadcast %265 : vector<8x1xf32> to vector<8x32xf32>
    %274 = arith.subf %259, %273 : vector<8x32xf32>
    %cst_101 = arith.constant 9.99999974E-6 : f32
    %275 = vector.broadcast %cst_101 : f32 to vector<8x1xf32>
    %276 = arith.addf %272, %275 : vector<8x1xf32>
    %277 = math.rsqrt %276 : vector<8x1xf32>
    %278 = vector.broadcast %277 : vector<8x1xf32> to vector<8x32xf32>
    %279 = arith.mulf %274, %278 : vector<8x32xf32>
    %280 = vector.broadcast %260 : vector<1x32xf32> to vector<8x32xf32>
    %281 = arith.mulf %279, %280 : vector<8x32xf32>
    %282 = vector.broadcast %261 : vector<1x32xf32> to vector<8x32xf32>
    %283 = arith.addf %281, %282 : vector<8x32xf32>
    %284 = arith.truncf %283 : vector<8x32xf32> to vector<8x32xbf16>
    %c0_102 = arith.constant 0 : index
    %c0_103 = arith.constant 0 : index
    %285 = vector.load %arg8[%c0_102, %c0_103] : memref<32x128xbf16, #tpu.memory_space<vmem>>, vector<32x128xbf16>
    %cst_104 = arith.constant dense<0.000000e+00> : vector<8x128xf32>
    %286 = tpu.matmul %284, %285, %cst_104 {dimension_numbers = #tpu.dot_dimension_numbers<[1], [0], [0], [1], [0, 0, 1, 1], [], []>} : vector<8x32xbf16>, vector<32x128xbf16>, vector<8x128xf32> -> vector<8x128xf32>
    %c0_105 = arith.constant 0 : index
    %c0_106 = arith.constant 0 : index
    %287 = vector.load %arg11[%c0_105, %c0_106] : memref<1x128xf32, #tpu.memory_space<vmem>>, vector<1x128xf32>
    %288 = vector.broadcast %287 : vector<1x128xf32> to vector<8x128xf32>
    %289 = arith.addf %286, %288 : vector<8x128xf32>
    %cst_107 = arith.constant 5.000000e-01 : f32
    %290 = vector.broadcast %cst_107 : f32 to vector<8x128xf32>
    %291 = arith.mulf %290, %289 : vector<8x128xf32>
    %cst_108 = arith.constant 0.707106769 : f32
    %292 = vector.broadcast %cst_108 : f32 to vector<8x128xf32>
    %293 = arith.mulf %289, %292 : vector<8x128xf32>
    %294 = math.erf %293 : vector<8x128xf32>
    %cst_109 = arith.constant 1.000000e+00 : f32
    %295 = vector.broadcast %cst_109 : f32 to vector<8x128xf32>
    %296 = arith.addf %295, %294 : vector<8x128xf32>
    %297 = arith.mulf %291, %296 : vector<8x128xf32>
    %298 = arith.truncf %297 : vector<8x128xf32> to vector<8x128xbf16>
    %c0_110 = arith.constant 0 : index
    %c0_111 = arith.constant 0 : index
    %299 = vector.load %arg9[%c0_110, %c0_111] : memref<128x32xbf16, #tpu.memory_space<vmem>>, vector<128x32xbf16>
    %cst_112 = arith.constant dense<0.000000e+00> : vector<8x32xf32>
    %300 = tpu.matmul %298, %299, %cst_112 {dimension_numbers = #tpu.dot_dimension_numbers<[1], [0], [0], [1], [0, 0, 1, 1], [], []>} : vector<8x128xbf16>, vector<128x32xbf16>, vector<8x32xf32> -> vector<8x32xf32>
    %c12 = arith.constant 12 : index
    %c0_113 = arith.constant 0 : index
    %301 = vector.load %arg10[%c12, %c0_113] : memref<16x32xf32, #tpu.memory_space<vmem>>, vector<1x32xf32>
    %302 = vector.broadcast %301 : vector<1x32xf32> to vector<8x32xf32>
    %303 = arith.addf %300, %302 : vector<8x32xf32>
    %304 = arith.addf %283, %303 : vector<8x32xf32>
    %c13 = arith.constant 13 : index
    %c0_114 = arith.constant 0 : index
    %305 = vector.load %arg10[%c13, %c0_114] : memref<16x32xf32, #tpu.memory_space<vmem>>, vector<1x32xf32>
    %c14 = arith.constant 14 : index
    %c0_115 = arith.constant 0 : index
    %306 = vector.load %arg10[%c14, %c0_115] : memref<16x32xf32, #tpu.memory_space<vmem>>, vector<1x32xf32>
    %cst_116 = arith.constant dense<0.000000e+00> : vector<8xf32>
    %307 = vector.multi_reduction <add>, %304, %cst_116 [1] : vector<8x32xf32> to vector<8xf32>
    %308 = vector.shape_cast %307 : vector<8xf32> to vector<8x1xf32>
    %cst_117 = arith.constant 3.200000e+01 : f32
    %309 = vector.broadcast %cst_117 : f32 to vector<8x1xf32>
    %310 = arith.divf %308, %309 : vector<8x1xf32>
    %311 = vector.broadcast %310 : vector<8x1xf32> to vector<8x32xf32>
    %312 = arith.subf %304, %311 : vector<8x32xf32>
    %313 = arith.mulf %312, %312 : vector<8x32xf32>
    %cst_118 = arith.constant dense<0.000000e+00> : vector<8xf32>
    %314 = vector.multi_reduction <add>, %313, %cst_118 [1] : vector<8x32xf32> to vector<8xf32>
    %315 = vector.shape_cast %314 : vector<8xf32> to vector<8x1xf32>
    %cst_119 = arith.constant 3.200000e+01 : f32
    %316 = vector.broadcast %cst_119 : f32 to vector<8x1xf32>
    %317 = arith.divf %315, %316 : vector<8x1xf32>
    %318 = vector.broadcast %310 : vector<8x1xf32> to vector<8x32xf32>
    %319 = arith.subf %304, %318 : vector<8x32xf32>
    %cst_120 = arith.constant 9.99999974E-6 : f32
    %320 = vector.broadcast %cst_120 : f32 to vector<8x1xf32>
    %321 = arith.addf %317, %320 : vector<8x1xf32>
    %322 = math.rsqrt %321 : vector<8x1xf32>
    %323 = vector.broadcast %322 : vector<8x1xf32> to vector<8x32xf32>
    %324 = arith.mulf %319, %323 : vector<8x32xf32>
    %325 = vector.broadcast %305 : vector<1x32xf32> to vector<8x32xf32>
    %326 = arith.mulf %324, %325 : vector<8x32xf32>
    %327 = vector.broadcast %306 : vector<1x32xf32> to vector<8x32xf32>
    %328 = arith.addf %326, %327 : vector<8x32xf32>
    %c0_121 = arith.constant 0 : index
    %c0_122 = arith.constant 0 : index
    %329 = vector.load %arg12[%c0_121, %c0_122] : memref<8x32xf32, #tpu.memory_space<vmem>>, vector<8x32xf32>
    tpu.vector_store %arg12[%c0_121, %c0_122], %328 {strides = array<i32>} : memref<8x32xf32, #tpu.memory_space<vmem>>, vector<8x32xf32>,
    return
  }
  func.func @transform_0(%arg0: i32) -> (i32, i32) {
    %c0_i32 = arith.constant 0 : i32
    %c0_i32_0 = arith.constant 0 : i32
    return %arg0, %c0_i32 : i32, i32
  }
  func.func @transform_1(%arg0: i32) -> (i32, i32) {
    %c0_i32 = arith.constant 0 : i32
    %c0_i32_0 = arith.constant 0 : i32
    return %arg0, %c0_i32 : i32, i32
  }
  func.func @transform_2(%arg0: i32) -> (i32, i32) {
    %c0_i32 = arith.constant 0 : i32
    %c0_i32_0 = arith.constant 0 : i32
    %c0_i32_1 = arith.constant 0 : i32
    return %c0_i32, %c0_i32_0 : i32, i32
  }
  func.func @transform_3(%arg0: i32) -> (i32, i32, i32) {
    %c0_i32 = arith.constant 0 : i32
    %c0_i32_0 = arith.constant 0 : i32
    %c0_i32_1 = arith.constant 0 : i32
    %c0_i32_2 = arith.constant 0 : i32
    return %c0_i32, %c0_i32_0, %c0_i32_1 : i32, i32, i32
  }
  func.func @transform_4(%arg0: i32) -> (i32, i32) {
    %c0_i32 = arith.constant 0 : i32
    %c0_i32_0 = arith.constant 0 : i32
    %c0_i32_1 = arith.constant 0 : i32
    return %c0_i32, %c0_i32_0 : i32, i32
  }
  func.func @transform_5(%arg0: i32) -> (i32, i32) {
    %c0_i32 = arith.constant 0 : i32
    %c0_i32_0 = arith.constant 0 : i32
    %c0_i32_1 = arith.constant 0 : i32
    return %c0_i32, %c0_i32_0 : i32, i32
  }
  func.func @transform_6(%arg0: i32) -> (i32, i32, i32) {
    %c0_i32 = arith.constant 0 : i32
    %c0_i32_0 = arith.constant 0 : i32
    %c0_i32_1 = arith.constant 0 : i32
    %c0_i32_2 = arith.constant 0 : i32
    return %c0_i32, %c0_i32_0, %c0_i32_1 : i32, i32, i32
  }
  func.func @transform_7(%arg0: i32) -> (i32, i32) {
    %c0_i32 = arith.constant 0 : i32
    %c0_i32_0 = arith.constant 0 : i32
    %c0_i32_1 = arith.constant 0 : i32
    return %c0_i32, %c0_i32_0 : i32, i32
  }
  func.func @transform_8(%arg0: i32) -> (i32, i32) {
    %c0_i32 = arith.constant 0 : i32
    %c0_i32_0 = arith.constant 0 : i32
    %c0_i32_1 = arith.constant 0 : i32
    return %c0_i32, %c0_i32_0 : i32, i32
  }
  func.func @transform_9(%arg0: i32) -> (i32, i32) {
    %c0_i32 = arith.constant 0 : i32
    %c0_i32_0 = arith.constant 0 : i32
    %c0_i32_1 = arith.constant 0 : i32
    return %c0_i32, %c0_i32_0 : i32, i32
  }
  func.func @transform_10(%arg0: i32) -> (i32, i32) {
    %c0_i32 = arith.constant 0 : i32
    %c0_i32_0 = arith.constant 0 : i32
    %c0_i32_1 = arith.constant 0 : i32
    return %c0_i32, %c0_i32_0 : i32, i32
  }
  func.func @transform_11(%arg0: i32) -> (i32, i32) {
    %c0_i32 = arith.constant 0 : i32
    %c0_i32_0 = arith.constant 0 : i32
    return %arg0, %c0_i32 : i32, i32
  }
}

</mosaic_0001>

<bundles_post_ra>
// kernel: tpu_custom_call.1
= control target key start
LH: loop header
LB: loop body
LE: loop exit
PB: predicated region body
PF: predicated region fallthrough
CT: control target
= control target key end

     0   :  { %s2527_s0 = inlined_call_operand.vmem [shape: f32[16,32], index: 0, kind: input, shape index: {}]   ;;  %s2528_s1 = inlined_call_operand.vmem [shape: f32[16,32], index: 1, kind: input, shape index: {}]   ;;  %s2529_s2 = inlined_call_operand.vmem [shape: bf16[32,96], index: 2, kind: input, shape index: {}]   ;;  %s2530_s3 = inlined_call_operand.vmem [shape: bf16[4,8,32], index: 3, kind: input, shape index: {}]   ;;  %s2531_s4 = inlined_call_operand.vmem [shape: bf16[32,32], index: 4, kind: input, shape index: {}]   ;;  %s2532_s5 = inlined_call_operand.hbm [shape: bf16[32,64], index: 5, kind: input, shape index: {}]   ;;  %s2533_s6 = inlined_call_operand.hbm [shape: bf16[4,8,32], index: 6, kind: input, shape index: {}]   ;;  %s2534_s7 = inlined_call_operand.hbm [shape: bf16[32,128], index: 7, kind: input, shape index: {}]   ;;  %s2535_s8 = inlined_call_operand.vmem [shape: bf16[128,32], index: 8, kind: input, shape index: {}]   ;;  %s2536_s9 = inlined_call_operand.hbm [shape: f32[16,32], index: 9, kind: input, shape index: {}]   ;;  %s2537_s10 = inlined_call_operand.vmem [shape: f32[1,128], index: 10, kind: input, shape index: {}]   ;;  %s2538_s11 = inlined_call_operand.hbm [shape: f32[16,32], index: 11, kind: output, shape index: {}]  }
   0x1   :  { %2544 = sst [smem:[#allocation20_spill]] %s2532_s5 }
   0x2   :  { %2545 = sst [smem:[#allocation21_spill]] %s2533_s6 }
   0x3   :  { %16 = vsyncpa [#allocation3], 0 }
   0x4   :  { %17 = vsyncpa [#allocation6], 0 }
   0x5   :  { %18 = vsyncpa [#allocation9], 0 }
   0x6   :  { %19 = vsyncpa [#allocation4], 0 }
   0x7   :  { %21 = vsyncpa [#allocation4 + $0x1], 0  ;;  %s2199_s17 = smov 0   ;;  %s2201_s18 = smov 0  }
   0x8   :  { %s2203_s19 = smov 0   ;;  %s2205_s20 = smov 0  }
   0x9 LB: > { %2546 = sst [smem:[#allocation15_spill]] %s2104_s17  ;;  %s2220_s21 = sadd.s32 4294967295, %s2116_s20   ;;  %s2116_s20 = sphi %s2205_s20, %s2559_s20   ;;  %s2112_s19 = sphi %s2203_s19, %s2561_s19   ;;  %s2108_s18 = sphi %s2201_s18, %s2563_s18   ;;  %s2104_s17 = sphi %s2199_s17, %s2562_s17  }
   0xa   : > { %2547 = sst [smem:[#allocation16_spill]] %s2112_s19  ;;  %s1636_s22 = sadd.s32 4294967294, %s2116_s20  }
   0xb   : > { %s2224_s23 = sadd.s32 1, %s2116_s20   ;;  %s275_s24 = sadd.s32 1, %s2112_s19 }
   0xc   : > { %2548 = sst [smem:[#allocation17_spill]] %s2224_s23  ;;  %s272_s25 = ssub.s32 %s2116_s20, %s2224_s23 }
   0xd   : > { %p285_p0 = scmp.ne.s32.totalorder %s2112_s19, %s2108_s18  ;;  %p273_p1 = scmp.eq.s32.totalorder %s272_s25, 0 }
   0xe   : > { %p286_p2 = scmp.eq.s32.totalorder %s2220_s21, 1  ;;  %p291_p3 = scmp.ne.s32.totalorder %s2108_s18, %s2104_s17 }
   0xf   : > { %p292_p4 = scmp.eq.s32.totalorder %s1636_s22, 1  ;;  %p1637_p7 = scmp.ge.s32.totalorder %s2116_s20, 1 }
  0x10   : > { %s2235_s26 = scalar_select %p273_p1, %s2112_s19, %s275_s24  }
  0x11   : > { %p2237_p5 = por %p286_p2, %p285_p0  ;;  %p2241_p6 = por %p292_p4, %p291_p3 }
  0x12   : > { %2549 = sst [smem:[#allocation18_spill]] %s2235_s26  ;;  %p299_p8 = scmp.lt.s32.totalorder %s2116_s20, 3 }
  0x13   : > { %s2551_s28 = scalar_select %p2241_p6, 1, 0 }
  0x14   : > { %p1802_p9 = scmp.eq.s32.totalorder %s2220_s21, 0  ;;  %p2248_p10 = pnand %p1637_p7, %p299_p8 }
  0x15   : > { %2552 = sst [smem:[#allocation19_spill]] %s2551_s28  ;;  %s2118_s24 = smov [#allocation5]  }
  0x16   : > { %s2554_s6 = sld [smem:[#allocation21_spill]]  ;;  %p1785_p11 = pneg %p2248_p10 }
  0x17   : > { %s2555_s5 = sld [smem:[#allocation20_spill]]  ;;  %s335_s25 = sshll.u32 %s2118_s24, 4  ;;  %s336_s25 = int_to_ptr.vmem [resolvable:$true] %s335_s25 }
  0x18   : > { %p2262_p12 = pnand %p1802_p9, %p1785_p11  ;;  %s2119_s30 = smov 64  }
  0x19   : > { %s2120_s12 = smov 4   ;;  %s364_s23 = sshll.u32 %s2536_s9, 4  ;;  %s365_s23 = int_to_ptr.hbm [resolvable:$true] %s364_s23 }
  0x1a   : > { %s2122_s28 = smov [#allocation7]   ;;  %s2125_s14 = smov 8  }
  0x1b   : > { %s349_s17 = sshll.u32 %s2122_s28, 4  ;;  %s350_s17 = int_to_ptr.vmem [resolvable:$true] %s349_s17 }
  0x1c   : > { %s333_s13 = sshll.u32 %s2554_s6, 4  ;;  %s2121_s6 = smov [#allocation2]   ;;  %s334_s13 = int_to_ptr.hbm [resolvable:$true] %s333_s13 }
  0x1d   : > { %s319_s16 = sshll.u32 %s2555_s5, 4  ;;  %s321_s26 = sshll.u32 %s2121_s6, 4  ;;  %s320_s16 = int_to_ptr.hbm [resolvable:$true] %s319_s16  ;;  %s322_s26 = int_to_ptr.vmem [resolvable:$true] %s321_s26 }
  0x1e   : > { %1791 = dma.hbm_to_vmem [thread:$0]  (!%p2262_p12), %s334_s13, 256, %s336_s25, [#allocation6], %s2119_s30, %s2119_s30, %s2120_s12  }
  0x1f   : > { %s347_s5 = sshll.u32 %s2534_s7, 4  ;;  %s2123_s6 = smov [#allocation8]   ;;  %s348_s5 = int_to_ptr.hbm [resolvable:$true] %s347_s5 }
  0x20   : > { %1788 = dma.hbm_to_vmem [thread:$0]  (!%p2262_p12), %s320_s16, 256, %s322_s26, [#allocation3], %s2119_s30, %s2119_s30, %s2120_s12  }
  0x21   : > { %1794 = dma.hbm_to_vmem [thread:$0]  (!%p2262_p12), %s348_s5, 256, %s350_s17, [#allocation6], %s2119_s30, %s2119_s30, %s2120_s12  }
  0x22   : > { %s366_s13 = sshll.u32 %s2123_s6, 4  ;;  %s2124_s25 = smov 128   ;;  %s367_s13 = int_to_ptr.vmem [resolvable:$true] %s366_s13 }
  0x23   : > { %1797 = dma.hbm_to_vmem [thread:$0]  (!%p2262_p12), %s365_s23, 256, %s367_s13, [#allocation9], %s2124_s25, %s2124_s25, %s2125_s14  }
  0x24   : > { %399 = sbr.rel (%p2248_p10) target bundleno = 3963 (0xf7b), region = 64 }
  0x29   : > { %2087 = dma.done.wait (%p1802_p9), [#allocation3], 256  }
  0x2a   : > { %2089 = vsyncadd (%p1802_p9), [#allocation3], 4294967040 }
  0x2b   : > { %2091 = dma.done.wait (%p1802_p9), [#allocation6], 512  }
  0x2c   : > { %2093 = vsyncadd (%p1802_p9), [#allocation6], 4294966784 }
  0x2d   : > { %2095 = dma.done.wait (%p1802_p9), [#allocation9], 256  }
  0x2e   : > { %2097 = vsyncadd (%p1802_p9), [#allocation9], 4294967040  ;;  %p458_p13 = scmp.lt.s32.totalorder %s2220_s21, 1  ;;  %v1752_v0 = vld [vmem:[%s2529_s2 + $0x8] sm:$0xff]  ;;  %v1751_v1 = vld [vmem:[%s2529_s2] sm:$0xff]  ;;  %vm486_vm0 = vcmask 261120  }
  0x2f   : > { %v1864_v3 = vld [vmem:[#allocation8 + $0x1] ss:$0 sm:$0xff]  ;;  %496 = vmatpush.bf16.msra.mxu0 %v1752_v0  ;;  %s2126_s30 = smov 32   ;;  %v1865_v8 = vld [vmem:[#allocation8] ss:$0 sm:$0xff]  ;;  %s2127_s12 = smov 96  }
  0x30   : > { %s2296_s5 = scalar_select %p458_p13, %s2220_s21, 1  ;;  %510 = vrot.lane.b32.xlu0 %v1864_v3, %s2126_s30  ;;  %vm529_vm1 = vcmask 64512   ;;  %v1866_v30 = vld [vmem:[#allocation8 + $0x2] ss:$0 sm:$0xff]  ;;  %vm569_vm2 = vcmask 1043456  }
  0x31   : > { %s2128_s15 = smov 88   ;;  %s2129_s24 = smov 120   ;;  %v587_v43 = vld [vmem:[%s2530_s3] sm:$0xf] }
  0x32   : > { %s1649_s17 = sshll.u32 %s2296_s5, 3  ;;  %s2130_s6 = smov 80   ;;  %v673_v44 = vsel %vm569_vm2, %v587_v43, 0 }
  0x33   : > { %s461_s26 = scalar_lea.vmem %s2527_s0, %s1649_s17  ;;  %497 = vmatpush.bf16.msra.mxu0 %v1751_v1  ;;  %s2131_s13 = smov 104  }
  0x34   : > { %v2310_v2 = vld [vmem:[%s461_s26] sm:$0xff]  ;;  %s2132_s25 = smov 64   ;;  %s2133_s14 = smov 112  }
  0x35   : > { %v469_v4 = vpack.c.bf16 %v2310_v2, %v2310_v2  ;;  %s2134_s19 = smov 72   ;;  %s2135_s28 = smov 48  }
  0x36   : > { %s2136_s29 = smov 56   ;;  %s2137_s16 = smov 40  }
  0x37   : > { %1659 = vmatmul.msk.bf16.vlgmr.msra.gmra.mxu0 %vm486_vm0, %v469_v4  ;;  %s2062_s26 = scalar_lea.hbm %s2538_s11, 16 }
  0xa2   : > { %v511_v5 = vpop.permute.xlu0 %510 }
  0xb4   : > { %v499_v6 = vpop.f32.mrf.mxu0 }
  0xb5   : > { %v513_v7 = vadd.f32 %v511_v5, %v499_v6  ;;  %v505_v11 = vadd.f32 %v1865_v8, %v499_v6 }
  0xb7   : > { %v522_v9 = vpack.c.bf16 %v513_v7, %v513_v7  ;;  %v506_v14 = vmul.f32 0.35355338, %v505_v11 }
  0xb9   : > { %v525_v10 = vunpack.c.l.b16 %v522_v9  ;;  %v521_v15 = vpack.c.bf16 %v506_v14, %v506_v14 }
  0xbb   : > { %v526_v12 = vpack.c.b16 %v525_v10, %v525_v10  ;;  %v589_v16 = vunpack.c.l.b16 %v521_v15 }
  0xbc   : > { %v501_v13 = vpop.f32.mrf.mxu0 }
  0xbd   : > { %527 = vrot.lane.b32.xlu0 %v526_v12, %s2127_s12  ;;  %v590_v17 = vpack.c.b16 %v589_v16, %v589_v16 }
  0xc5   : > { %593 = vrot.lane.b32.xlu0 %v526_v12, %s2128_s15 }
  0xcd   : > { %591 = vrot.lane.b32.xlu0 %v590_v17, %s2129_s24 }
  0xd5   : > { %690 = vrot.lane.b32.xlu0 %v526_v12, %s2130_s6 }
  0xdd   : > { %767 = vrot.lane.b32.xlu0 %v590_v17, %s2131_s13 }
 0x12f   : > { %v528_v18 = vpop.permute.xlu0 %527 }
 0x130   : > { %v534_v19 = vsel %vm529_vm1, %v528_v18, 0 }
 0x131   : > { %543 = vmatpush.bf16.xpose.msra.mxu1 %v534_v19 }
 0x137   : > { %v594_v20 = vpop.permute.xlu0 %593 }
 0x138   : > { %1660 = vmatmul.msk.bf16.vlgmr.msra.gmra.mxu1 %vm529_vm1, %v521_v15  ;;  %v599_v21 = vsel %vm529_vm1, %v594_v20, 0 }
 0x139   : > { %608 = vmatpush.bf16.xpose.msra.mxu3 %v599_v21  ;;  %682 = vmatpush.bf16.msrb.mxu1 %v673_v44 }
 0x13f   : > { %v592_v22 = vpop.permute.xlu0 %591 }
 0x140   : > { %1662 = vmatmul.msk.bf16.vlgmr.msra.gmra.mxu3 %vm529_vm1, %v592_v22 }
 0x147   : > { %v691_v23 = vpop.permute.xlu0 %690 }
 0x148   : > { %v696_v24 = vsel %vm529_vm1, %v691_v23, 0 }
 0x149   : > { %705 = vmatpush.bf16.xpose.msrb.mxu3 %v696_v24 }
 0x14f   : > { %v768_v63 = vpop.permute.xlu0 %767 }
 0x1b5   : > { %v545_v25 = vpop.f32.mrf.mxu1 }
 0x1b6   : > { %v549_v26 = vsel %vm529_vm1, %v545_v25, -inf }
 0x1b7   : > { %550 = vmax.xlane.f32.xlu1 %v549_v26 }
 0x1bd   : > { %v547_v27 = vpop.f32.mrf.mxu1 }
 0x1c3   : > { %v610_v28 = vpop.f32.mrf.mxu3 }
 0x1c4   : > { %v614_v42 = vsel %vm529_vm1, %v610_v28, -inf }
 0x1cb   : > { %v612_v29 = vpop.f32.mrf.mxu3 }
 0x1cc   : > { %v1664_v29 = vld [vmem:[%s2530_s3 + $0x4] sm:$0xf] }
 0x1d0   : > { %517 = vrot.lane.b32.xlu1 %v1866_v30, %s2132_s25  ;;  %v654_v30 = vsel %vm569_vm2, %v1664_v29, 0  ;;  %v1869_v29 = vld [vmem:[#allocation8 + $0x5] ss:$0 sm:$0xff] }
 0x1d8   : > { %688 = vrot.lane.b32.xlu1 %v590_v17, %s2133_s14 }
 0x22a   : > { %v551_v31 = vpop.xlane.xlu1 %550 }
 0x22b   : > { %v552_v32 = vsub.f32 %v545_v25, %v551_v31 }
 0x22d   : > { %v553_v33 = vmul.f32 1.442695, %v552_v32 }
 0x22f   : > { %1880 = vpow2.f32 %v553_v33 }
 0x235   : > { %v1881_v34 = vpop.eup %1880 }
 0x236   : > { %v555_v35 = vsel %vm529_vm1, %v1881_v34, 0.0 }
 0x237   : > { %556 = vadd.xlane.f32.xlu2 %v555_v35 }
 0x242   : > { %v518_v36 = vpop.permute.xlu1 %517 }
 0x243   : > { %v520_v37 = vadd.f32 %v518_v36, %v499_v6 }
 0x245   : > { %v523_v38 = vpack.c.bf16 %v520_v37, %v520_v37  ;;  %v1669_v37 = vld [vmem:[%s2530_s3 + $0x8] sm:$0xf] }
 0x247   : > { %v562_v39 = vunpack.c.l.b16 %v523_v38  ;;  %v751_v38 = vsel %vm569_vm2, %v1669_v37, 0 }
 0x249   : > { %v2330_v41 = vpack.c.b16 %v562_v39, %v562_v39 }
 0x24a   : > { %v689_v40 = vpop.permute.xlu1 %688 }
 0x24b   : > { %1667 = vmatmul.msk.bf16.vlgmr.msrb.gmra.mxu3 %vm529_vm1, %v689_v40 }
 0x24f   : > { %564 = vrot.lane.b32.xlu2 %v2330_v41, %s2132_s25  ;;  %s465_s25 = scalar_lea.vmem %s2528_s1, %s1649_s17  ;;  %s455_s17 = sand.u32 1, %s2108_s18  }
 0x257   : > { %769 = vrot.lane.b32.xlu2 %v526_v12, %s2134_s19 }
 0x280   : > { %615 = vmax.xlane.f32.xlu2 %v614_v42 }
 0x2aa   : > { %v557_v45 = vpop.xlane.xlu2 %556 }
 0x2ab   : > { %1882 = vrcp.f32 %v557_v45  ;;  %v1673_v45 = vld [vmem:[%s2530_s3 + $0xc] sm:$0xf] }
 0x2b1   : > { %v1883_v46 = vpop.eup %1882 }
 0x2b2   : > { %v559_v47 = vmul.f32 %v1883_v46, %v1881_v34  ;;  %v565_v48 = vpop.permute.xlu2 %564  ;;  %v830_v46 = vsel %vm569_vm2, %v1673_v45, 0 }
 0x2b3   : > { %v571_v49 = vsel %vm569_vm2, %v565_v48, 0 }
 0x2b4   : > { %580 = vmatpush.bf16.msrb.mxu0 %v571_v49  ;;  %v560_v50 = vpack.c.bf16 %v559_v47, %v559_v47 }
 0x2b7   : > { %1661 = vmatmul.msk.bf16.vlgmr.msrb.gmra.mxu0 %vm529_vm1, %v560_v50 }
 0x2b8   : > { %663 = vmatpush.bf16.msra.mxu0 %v654_v30 }
 0x2ba   : > { %v770_v51 = vpop.permute.xlu2 %769 }
 0x2bb   : > { %v775_v52 = vsel %vm529_vm1, %v770_v51, 0 }
 0x2bc   : > { %784 = vmatpush.bf16.xpose.msra.mxu1 %v775_v52  ;;  %760 = vmatpush.bf16.msrb.mxu0 %v751_v38 }
 0x2ce   : > { %v707_v53 = vpop.f32.mrf.mxu3 }
 0x2cf   : > { %v711_v54 = vsel %vm529_vm1, %v707_v53, -inf }
 0x2d0   : > { %712 = vmax.xlane.f32.xlu0 %v711_v54 }
 0x2d6   : > { %v709_v55 = vpop.f32.mrf.mxu3 }
 0x2f3   : > { %v616_v56 = vpop.xlane.xlu2 %615 }
 0x2f4   : > { %v617_v57 = vsub.f32 %v610_v28, %v616_v56  ;;  %v1867_v56 = vld [vmem:[#allocation8 + $0x3] ss:$0 sm:$0xff] }
 0x2f6   : > { %v618_v58 = vmul.f32 1.442695, %v617_v57 }
 0x2f8   : > { %1884 = vpow2.f32 %v618_v58 }
 0x2fe   : > { %v1885_v59 = vpop.eup %1884 }
 0x2ff   : > { %v620_v60 = vsel %vm529_vm1, %v1885_v59, 0.0 }
 0x300   : > { %621 = vadd.xlane.f32.xlu2 %v620_v60 }
 0x334   : > { %v582_v61 = vpop.f32.mrf.mxu0 }
 0x335   : > { %v586_v62 = vpack.c.bf16 %v582_v61, %v582_v61 }
 0x337   : > { %1666 = vmatmul.msk.bf16.vlgmr.msrb.gmra.mxu1 %vm529_vm1, %v586_v62 }
 0x33c   : > { %v584_v0 = vpop.f32.mrf.mxu0 }
 0x343   : > { %v713_v1 = vpop.xlane.xlu0 %712 }
 0x344   : > { %v714_v3 = vsub.f32 %v707_v53, %v713_v1 }
 0x346   : > { %v715_v4 = vmul.f32 1.442695, %v714_v3 }
 0x347   : > { %1671 = vmatmul.msk.bf16.vlgmr.msra.gmra.mxu1 %vm529_vm1, %v768_v63  ;;  %v2138_v63 = vmov 32.0  }
 0x348   : > { %1886 = vpow2.f32 %v715_v4 }
 0x34e   : > { %v1887_v5 = vpop.eup %1886 }
 0x34f   : > { %v717_v6 = vsel %vm529_vm1, %v1887_v5, 0.0 }
 0x350   : > { %718 = vadd.xlane.f32.xlu0 %v717_v6 }
 0x364   : > { %723 = vrot.lane.b32.xlu0 %v2330_v41, %s2135_s28 }
 0x373   : > { %v622_v16 = vpop.xlane.xlu2 %621 }
 0x3b4   : > { %v2348_v7 = vpop.f32.mrf.mxu1 }
 0x3bc   : > { %v686_v8 = vpop.f32.mrf.mxu1 }
 0x3c3   : > { %v719_v18 = vpop.xlane.xlu0 %718 }
 0x3c4   : > { %v786_v9 = vpop.f32.mrf.mxu1 }
 0x3c5   : > { %v790_v10 = vsel %vm529_vm1, %v786_v9, -inf }
 0x3c6   : > { %791 = vmax.xlane.f32.xlu1 %v790_v10 }
 0x3cc   : > { %v788_v11 = vpop.f32.mrf.mxu1 }
 0x3cd   : > { %v1756_v11 = vld [vmem:[#allocation2 + $0x8] sm:$0xff] }
 0x3ce   : > { %947 = vmatpush.bf16.msrb.mxu1 %v1756_v11 }
 0x3d6   : > { %v724_v20 = vpop.permute.xlu0 %723 }
 0x3d7   : > { %v729_v24 = vsel %vm569_vm2, %v724_v20, 0 }
 0x3df   : > { %626 = vrot.lane.b32.xlu1 %v2330_v41, %s2136_s29 }
 0x439   : > { %v792_v12 = vpop.xlane.xlu1 %791 }
 0x43a   : > { %v793_v13 = vsub.f32 %v786_v9, %v792_v12  ;;  %v468_v12 = vld [vmem:[%s465_s25] sm:$0xff] }
 0x43c   : > { %v794_v14 = vmul.f32 1.442695, %v793_v13  ;;  %v1755_v13 = vld [vmem:[#allocation2] sm:$0xff] }
 0x43d   : > { %948 = vmatpush.bf16.msrb.mxu1 %v1755_v13 }
 0x43e   : > { %1888 = vpow2.f32 %v794_v14  ;;  %v921_v14 = vpack.c.bf16 %v468_v12, %v468_v12 }
 0x43f   : > { %1890 = vrcp.f32 %v622_v16  ;;  %v1753_v16 = vld [vmem:[%s2531_s4] sm:$0xff] }
 0x440   : > { %1892 = vrcp.f32 %v719_v18  ;;  %1692 = vmatmul.msk.bf16.vlgmr.msrb.gmra.mxu1 %vm486_vm0, %v921_v14 }
 0x444   : > { %v1889_v15 = vpop.eup %1888 }
 0x445   : > { %v796_v17 = vsel %vm529_vm1, %v1889_v15, 0.0  ;;  %v1891_v19 = vpop.eup %1890 }
 0x446   : > { %797 = vadd.xlane.f32.xlu2 %v796_v17  ;;  %v624_v21 = vmul.f32 %v1891_v19, %v1885_v59  ;;  %v1893_v26 = vpop.eup %1892  ;;  %v1870_v17 = vld [vmem:[#allocation8 + $0x8] ss:$0 sm:$0xff] }
 0x447   : > { %v721_v27 = vmul.f32 %v1893_v26, %v1887_v5 }
 0x448   : > { %v625_v25 = vpack.c.bf16 %v624_v21, %v624_v21 }
 0x449   : > { %v722_v28 = vpack.c.bf16 %v721_v27, %v721_v27  ;;  %v1868_v27 = vld [vmem:[#allocation8 + $0x4] ss:$0 sm:$0xff] }
 0x451   : > { %v627_v22 = vpop.permute.xlu1 %626 }
 0x452   : > { %v632_v23 = vsel %vm569_vm2, %v627_v22, 0 }
 0x453   : > { %641 = vmatpush.bf16.msra.mxu2 %v632_v23 }
 0x456   : > { %1663 = vmatmul.msk.bf16.vlgmr.msra.gmra.mxu2 %vm529_vm1, %v625_v25 }
 0x457   : > { %738 = vmatpush.bf16.msrb.mxu2 %v729_v24 }
 0x45b   : > { %839 = vmatpush.bf16.msra.mxu2 %v830_v46 }
 0x45e   : > { %802 = vrot.lane.b32.xlu2 %v2330_v41, %s2137_s16 }
 0x466   : > { %1668 = vmatmul.msk.bf16.vlgmr.msrb.gmra.mxu2 %vm529_vm1, %v722_v28 }
 0x4b9   : > { %v798_v31 = vpop.xlane.xlu2 %797 }
 0x4ba   : > { %1894 = vrcp.f32 %v798_v31 }
 0x4bb   : > { %1896 = vrcp.f32 %v2138_v63 }
 0x4c0   : > { %v1895_v32 = vpop.eup %1894 }
 0x4c1   : > { %v800_v33 = vmul.f32 %v1895_v32, %v1889_v15  ;;  %v803_v34 = vpop.permute.xlu2 %802  ;;  %v1897_v0 = vpop.eup %1896  ;;  %v1754_v15 = vld [vmem:[%s2531_s4 + $0x8] sm:$0xff] }
 0x4c2   : > { %v808_v35 = vsel %vm569_vm2, %v803_v34, 0  ;;  %v856_v1 = vmul.f32 32.0, %v1897_v0  ;;  %vm860_vm3 = vweird.f32 %v1897_v0  ;;  %v950_v34 = vpop.f32.mrf.mxu1 }
 0x4c3   : > { %v801_v36 = vpack.c.bf16 %v800_v33, %v800_v33  ;;  %817 = vmatpush.bf16.msra.mxu3 %v808_v35  ;;  %v1871_v35 = vld [vmem:[#allocation8 + $0x7] ss:$0 sm:$0xff] }
 0x4c4   : > { %v857_v3 = vsub.f32 1.0, %v856_v1  ;;  %v1023_v1 = vld [vmem:[#allocation5] sm:$0xf] }
 0x4c6   : > { %1672 = vmatmul.msk.bf16.vlgmr.msra.gmra.mxu3 %vm529_vm1, %v801_v36  ;;  %v858_v4 = vmul.f32 %v1897_v0, %v857_v3  ;;  %v956_v36 = vadd.f32 %v1871_v35, %v950_v34  ;;  %v1112_v3 = vsel %vm569_vm2, %v1023_v1, 0 }
 0x4c8   : > { %v859_v5 = vadd.f32 %v1897_v0, %v858_v4  ;;  %v965_v38 = vpack.c.bf16 %v956_v36, %v956_v36 }
 0x4ca   : > { %v2378_v6 = vsel %vm860_vm3, %v1897_v0, %v859_v5  ;;  %v952_v37 = vpop.f32.mrf.mxu1 }
 0x4d9   : > { %v643_v39 = vpop.f32.mrf.mxu2 }
 0x4da   : > { %v647_v40 = vpack.c.bf16 %v643_v39, %v643_v39  ;;  %v971_v39 = vsel %vm529_vm1, %v965_v38, 0 }
 0x4db   : > { %980 = vmatpush.bf16.xpose.msrb.mxu3 %v971_v39 }
 0x4dc   : > { %1665 = vmatmul.msk.bf16.vlgmr.msra.gmra.mxu0 %vm529_vm1, %v647_v40  ;;  %v1872_v40 = vld [vmem:[#allocation8 + $0x6] ss:$0 sm:$0xff] }
 0x4dd   : > { %913 = vmatpush.bf16.msra.mxu0 %v1754_v15 }
 0x4e1   : > { %v645_v41 = vpop.f32.mrf.mxu2  ;;  %914 = vmatpush.bf16.msra.mxu0 %v1753_v16 }
 0x4e9   : > { %v740_v42 = vpop.f32.mrf.mxu2 }
 0x4ea   : > { %v744_v43 = vpack.c.bf16 %v740_v42, %v740_v42 }
 0x4ec   : > { %1670 = vmatmul.msk.bf16.vlgmr.msrb.gmra.mxu0 %vm529_vm1, %v744_v43 }
 0x4f1   : > { %v742_v44 = vpop.f32.mrf.mxu2 }
 0x549   : > { %v819_v47 = vpop.f32.mrf.mxu3 }
 0x54a   : > { %v823_v48 = vpack.c.bf16 %v819_v47, %v819_v47 }
 0x54c   : > { %1674 = vmatmul.msk.bf16.vlgmr.msra.gmra.mxu2 %vm529_vm1, %v823_v48  ;;  %v1030_v48 = vunpack.c.l.b16 %v965_v38 }
 0x551   : > { %v821_v49 = vpop.f32.mrf.mxu3 }
 0x552   : > { %v1031_v49 = vpack.c.b16 %v1030_v48, %v1030_v48 }
 0x559   : > { %v665_v50 = vpop.f32.mrf.mxu0 }
 0x55a   : > { %v685_v52 = vadd.f32 %v2348_v7, %v665_v50 }
 0x561   : > { %v667_v51 = vpop.f32.mrf.mxu0 }
 0x569   : > { %v762_v53 = vpop.f32.mrf.mxu0 }
 0x56a   : > { %v766_v54 = vadd.f32 %v762_v53, %v685_v52 }
 0x571   : > { %v764_v55 = vpop.f32.mrf.mxu0 }
 0x5cf   : > { %v841_v57 = vpop.f32.mrf.mxu2 }
 0x5d0   : > { %v845_v58 = vadd.f32 %v841_v57, %v766_v54 }
 0x5d2   : > { %v848_v59 = vadd.f32 %v1867_v56, %v845_v58 }
 0x5d4   : > { %v849_v60 = vadd.f32 %v848_v59, %v2310_v2 }
 0x5d6   : > { %v852_v61 = vsel %vm486_vm0, %v849_v60, 0.0 }
 0x5d7   : > { %v843_v62 = vpop.f32.mrf.mxu2  ;;  %853 = vadd.xlane.f32.xlu1 %v852_v61 }
 0x5f0   : > { %960 = vrot.lane.b32.xlu1 %v1870_v17, %s2126_s30  ;;  %s1648_s30 = sshll.u32 %s455_s17, 3 }
 0x64a   : > { %v854_v7 = vpop.xlane.xlu1 %853 }
 0x64b   : > { %v862_v8 = vmul.f32 %v2378_v6, %v854_v7 }
 0x64d   : > { %v863_v9 = vsub.f32 %v849_v60, %v862_v8 }
 0x64f   : > { %v864_v2 = vmul.f32 %v863_v9, %v863_v9 }
 0x651   : > { %v865_v10 = vsel %vm486_vm0, %v864_v2, 0.0 }
 0x652   : > { %866 = vadd.xlane.f32.xlu0 %v865_v10 }
 0x662   : > { %v961_v53 = vpop.permute.xlu1 %960 }
 0x663   : > { %v963_v54 = vadd.f32 %v961_v53, %v950_v34 }
 0x665   : > { %v966_v55 = vpack.c.bf16 %v963_v54, %v963_v54 }
 0x667   : > { %v999_v56 = vunpack.c.l.b16 %v966_v55 }
 0x669   : > { %v2407_v57 = vpack.c.b16 %v999_v56, %v999_v56 }
 0x6c5   : > { %v867_v18 = vpop.xlane.xlu0 %866 }
 0x6c6   : > { %v868_v19 = vmul.f32 %v867_v18, %v2378_v6 }
 0x6c8   : > { %v869_v20 = vadd.f32 1e-05, %v868_v19 }
 0x6ca   : > { %1898 = vrsqrt.f32 %v869_v20  ;;  %vm876_vm5 = vweird.f32 %v869_v20 }
 0x6d0   : > { %v1899_v21 = vpop.eup %1898 }
 0x6d1   : > { %v871_v22 = vmul.f32 %v1899_v21, %v869_v20  ;;  %vm877_vm4 = vweird.f32 %v1899_v21 }
 0x6d2   : > { %vm878_vm6 = vmor %vm876_vm5, %vm877_vm4 }
 0x6d3   : > { %v872_v23 = vmul.f32 %v1899_v21, %v871_v22 }
 0x6d5   : > { %v873_v24 = vmul.f32 0.5, %v872_v23 }
 0x6d7   : > { %v874_v25 = vsub.f32 1.5, %v873_v24 }
 0x6d9   : > { %v875_v26 = vmul.f32 %v1899_v21, %v874_v25 }
 0x6db   : > { %v879_v28 = vsel %vm878_vm6, %v1899_v21, %v875_v26 }
 0x6dc   : > { %v880_v30 = vmul.f32 %v879_v28, %v863_v9 }
 0x6de   : > { %v882_v31 = vmul.f32 %v1868_v27, %v880_v30 }
 0x6e0   : > { %v2396_v32 = vadd.f32 %v1869_v29, %v882_v31 }
 0x6e2   : > { %v885_v33 = vpack.c.bf16 %v2396_v32, %v2396_v32 }
 0x6e4   : > { %1683 = vmatmul.msk.bf16.vlgmr.msra.gmra.mxu0 %vm486_vm0, %v885_v33 }
 0x761   : > { %v916_v41 = vpop.f32.mrf.mxu0 }
 0x762   : > { %v917_v42 = vadd.f32 %v1872_v40, %v916_v41 }
 0x764   : > { %v920_v43 = vmul.f32 0.35355338, %v917_v42 }
 0x766   : > { %v964_v44 = vpack.c.bf16 %v920_v43, %v920_v43 }
 0x768   : > { %v1025_v45 = vunpack.c.l.b16 %v964_v44  ;;  %1693 = vmatmul.msk.bf16.vlgmr.msrb.gmra.mxu3 %vm529_vm1, %v964_v44 }
 0x769   : > { %v918_v46 = vpop.f32.mrf.mxu0 }
 0x76a   : > { %v1026_v47 = vpack.c.b16 %v1025_v45, %v1025_v45 }
 0x76c   : > { %1027 = vrot.lane.b32.xlu1 %v1026_v47, %s2129_s24 }
 0x774   : > { %1129 = vrot.lane.b32.xlu1 %v1031_v49, %s2133_s14 }
 0x77c   : > { %1206 = vrot.lane.b32.xlu1 %v1026_v47, %s2131_s13 }
 0x7de   : > { %v1028_v7 = vpop.permute.xlu1 %1027 }
 0x7e6   : > { %v1130_v11 = vpop.permute.xlu1 %1129 }
 0x7e7   : > { %v1135_v14 = vsel %vm529_vm1, %v1130_v11, 0 }
 0x7eb   : > { %v982_v50 = vpop.f32.mrf.mxu3 }
 0x7ec   : > { %v986_v51 = vsel %vm529_vm1, %v982_v50, -inf }
 0x7ed   : > { %987 = vmax.xlane.f32.xlu2 %v986_v51 }
 0x7ee   : > { %v1207_v21 = vpop.permute.xlu1 %1206 }
 0x7f3   : > { %v984_v52 = vpop.f32.mrf.mxu3 }
 0x805   : > { %1001 = vrot.lane.b32.xlu2 %v2407_v57, %s2127_s12  ;;  %s1748_s12 = sshll.u32 %s2220_s21, 3  ;;  %s1509_s21 = scalar_lea.sflag [#allocation4], %s455_s17 }
 0x80d   : > { %1208 = vrot.lane.b32.xlu2 %v1031_v49, %s2131_s13  ;;  %s457_s13 = scalar_lea.vmem [#allocation10], %s1648_s30 }
 0x860   : > { %v988_v58 = vpop.xlane.xlu2 %987 }
 0x861   : > { %v989_v59 = vsub.f32 %v982_v50, %v988_v58 }
 0x863   : > { %v990_v60 = vmul.f32 1.442695, %v989_v59 }
 0x865   : > { %1900 = vpow2.f32 %v990_v60  ;;  %v1088_v60 = vld [vmem:[#allocation5 + $0x4] sm:$0xf] }
 0x868   : > { %v1002_v61 = vpop.permute.xlu2 %1001 }
 0x869   : > { %v1007_v62 = vsel %vm569_vm2, %v1002_v61, 0  ;;  %v1093_v61 = vsel %vm569_vm2, %v1088_v60, 0 }
 0x86a   : > { %1016 = vmatpush.bf16.msrb.mxu2 %v1007_v62  ;;  %1102 = vmatpush.bf16.msra.mxu3 %v1093_v61  ;;  %v1185_v62 = vld [vmem:[#allocation5 + $0x8] sm:$0xf]  ;;  %v1763_v61 = vld [vmem:[%s2535_s8 + $0x20] sm:$0xff] }
 0x86b   : > { %v1901_v63 = vpop.eup %1900 }
 0x86c   : > { %v992_v0 = vsel %vm529_vm1, %v1901_v63, 0.0 }
 0x86d   : > { %993 = vadd.xlane.f32.xlu0 %v992_v0 }
 0x86e   : > { %1121 = vmatpush.bf16.msra.mxu2 %v1112_v3 }
 0x870   : > { %v1209_v9 = vpop.permute.xlu2 %1208 }
 0x871   : > { %v1214_v10 = vsel %vm529_vm1, %v1209_v9, 0 }
 0x881   : > { %1032 = vrot.lane.b32.xlu0 %v1031_v49, %s2129_s24 }
 0x889   : > { %1127 = vrot.lane.b32.xlu0 %v1026_v47, %s2133_s14  ;;  %s1521_s14 = sshll.u32 %s457_s13, 4  ;;  %s1522_s14 = int_to_ptr.vmem [resolvable:$true] %s1521_s14 }
 0x8e0   : > { %v994_v4 = vpop.xlane.xlu0 %993 }
 0x8e1   : > { %1902 = vrcp.f32 %v994_v4 }
 0x8e7   : > { %v1903_v5 = vpop.eup %1902 }
 0x8e8   : > { %v996_v8 = vmul.f32 %v1903_v5, %v1901_v63  ;;  %v1190_v63 = vsel %vm569_vm2, %v1185_v62, 0 }
 0x8e9   : > { %1199 = vmatpush.bf16.msrb.mxu3 %v1190_v63 }
 0x8ea   : > { %v997_v2 = vpack.c.bf16 %v996_v8, %v996_v8 }
 0x8ec   : > { %1694 = vmatmul.msk.bf16.vlgmr.msrb.gmra.mxu2 %vm529_vm1, %v997_v2 }
 0x8ed   : > { %1223 = vmatpush.bf16.xpose.msrb.mxu2 %v1214_v10 }
 0x8f3   : > { %v1033_v12 = vpop.permute.xlu0 %1032 }
 0x8f4   : > { %v1038_v13 = vsel %vm529_vm1, %v1033_v12, 0  ;;  %v1264_v12 = vld [vmem:[#allocation5 + $0xc] sm:$0xf] }
 0x8f5   : > { %1047 = vmatpush.bf16.xpose.msrb.mxu0 %v1038_v13  ;;  %v1269_v13 = vsel %vm569_vm2, %v1264_v12, 0 }
 0x8fb   : > { %v1128_v15 = vpop.permute.xlu0 %1127 }
 0x8fc   : > { %1695 = vmatmul.msk.bf16.vlgmr.msrb.gmra.mxu0 %vm529_vm1, %v1028_v7 }
 0x8fd   : > { %1144 = vmatpush.bf16.xpose.msra.mxu0 %v1135_v14 }
 0x90c   : > { %1699 = vmatmul.msk.bf16.vlgmr.msra.gmra.mxu0 %vm529_vm1, %v1128_v15 }
 0x96f   : > { %v1018_v16 = vpop.f32.mrf.mxu2 }
 0x970   : > { %v1022_v17 = vpack.c.bf16 %v1018_v16, %v1018_v16 }
 0x972   : > { %1698 = vmatmul.msk.bf16.vlgmr.msra.gmra.mxu2 %vm529_vm1, %v1022_v17 }
 0x977   : > { %v1020_v18 = vpop.f32.mrf.mxu2 }
 0x979   : > { %v1049_v19 = vpop.f32.mrf.mxu0 }
 0x97a   : > { %v1053_v20 = vsel %vm529_vm1, %v1049_v19, -inf }
 0x97b   : > { %1054 = vmax.xlane.f32.xlu2 %v1053_v20 }
 0x981   : > { %v1051_v22 = vpop.f32.mrf.mxu0 }
 0x982   : > { %1702 = vmatmul.msk.bf16.vlgmr.msrb.gmra.mxu2 %vm529_vm1, %v1207_v21 }
 0x989   : > { %v1146_v23 = vpop.f32.mrf.mxu0 }
 0x98a   : > { %v1150_v24 = vsel %vm529_vm1, %v1146_v23, -inf }
 0x98b   : > { %1151 = vmax.xlane.f32.xlu0 %v1150_v24 }
 0x991   : > { %v1148_v25 = vpop.f32.mrf.mxu0 }
 0x99f   : > { %1065 = vrot.lane.b32.xlu0 %v2407_v57, %s2128_s15 }
 0x9ee   : > { %v1055_v26 = vpop.xlane.xlu2 %1054 }
 0x9ef   : > { %v1056_v27 = vsub.f32 %v1049_v19, %v1055_v26 }
 0x9f1   : > { %v1057_v28 = vmul.f32 1.442695, %v1056_v27 }
 0x9f3   : > { %1904 = vpow2.f32 %v1057_v28 }
 0x9f5   : > { %v2429_v29 = vpop.f32.mrf.mxu2 }
 0x9f9   : > { %v1905_v30 = vpop.eup %1904 }
 0x9fa   : > { %v1059_v31 = vsel %vm529_vm1, %v1905_v30, 0.0 }
 0x9fb   : > { %1060 = vadd.xlane.f32.xlu2 %v1059_v31 }
 0x9fd   : > { %v1125_v33 = vpop.f32.mrf.mxu2 }
 0x9fe   : > { %v1152_v34 = vpop.xlane.xlu0 %1151 }
 0x9ff   : > { %v1153_v35 = vsub.f32 %v1146_v23, %v1152_v34  ;;  %v1873_v23 = vld [vmem:[#allocation8 + $0x9] ss:$0 sm:$0xff] }
 0xa01   : > { %v1154_v36 = vmul.f32 1.442695, %v1153_v35 }
 0xa03   : > { %1906 = vpow2.f32 %v1154_v36  ;;  %v1758_v36 = vld [vmem:[#allocation7 + $0x8] sm:$0xff] }
 0xa05   : > { %v1225_v37 = vpop.f32.mrf.mxu2 }
 0xa06   : > { %v1229_v38 = vsel %vm529_vm1, %v1225_v37, -inf }
 0xa07   : > { %1230 = vmax.xlane.f32.xlu1 %v1229_v38 }
 0xa09   : > { %v1907_v39 = vpop.eup %1906 }
 0xa0a   : > { %v1156_v41 = vsel %vm529_vm1, %v1907_v39, 0.0 }
 0xa0d   : > { %v1227_v40 = vpop.f32.mrf.mxu2 }
 0xa0f   : > { %1157 = vadd.xlane.f32.xlu1 %v1156_v41 }
 0xa11   : > { %v1066_v42 = vpop.permute.xlu0 %1065 }
 0xa12   : > { %v1071_v43 = vsel %vm569_vm2, %v1066_v42, 0 }
 0xa13   : > { %1080 = vmatpush.bf16.msra.mxu1 %v1071_v43  ;;  %1162 = vrot.lane.b32.xlu2 %v2407_v57, %s2130_s6  ;;  %s1519_s6 = scalar_lea.hbm %s2538_s11, %s1748_s12 }
 0xa6e   : > { %v1061_v44 = vpop.xlane.xlu2 %1060 }
 0xa6f   : > { %1908 = vrcp.f32 %v1061_v44 }
 0xa75   : > { %v1909_v45 = vpop.eup %1908 }
 0xa76   : > { %v1063_v46 = vmul.f32 %v1909_v45, %v1905_v30  ;;  %v1163_v47 = vpop.permute.xlu2 %1162 }
 0xa77   : > { %v1168_v48 = vsel %vm569_vm2, %v1163_v47, 0 }
 0xa78   : > { %v1064_v49 = vpack.c.bf16 %v1063_v46, %v1063_v46  ;;  %1177 = vmatpush.bf16.msrb.mxu1 %v1168_v48  ;;  %v1874_v46 = vld [vmem:[#allocation8 + $0xa] ss:$0 sm:$0xff]  ;;  %v1875_v48 = vld [vmem:[#allocation8 + $0xb] ss:$0 sm:$0xff] }
 0xa7a   : > { %v1231_v50 = vpop.xlane.xlu1 %1230  ;;  %1696 = vmatmul.msk.bf16.vlgmr.msra.gmra.mxu1 %vm529_vm1, %v1064_v49 }
 0xa7b   : > { %v1232_v51 = vsub.f32 %v1225_v37, %v1231_v50  ;;  %v1757_v37 = vld [vmem:[#allocation7] sm:$0xff] }
 0xa7c   : > { %1278 = vmatpush.bf16.msra.mxu1 %v1269_v13 }
 0xa7d   : > { %v1233_v52 = vmul.f32 1.442695, %v1232_v51 }
 0xa7f   : > { %1910 = vpow2.f32 %v1233_v52 }
 0xa82   : > { %v1158_v53 = vpop.xlane.xlu1 %1157 }
 0xa83   : > { %1912 = vrcp.f32 %v1158_v53  ;;  %v1766_v53 = vld [vmem:[%s2535_s8 + $0x38] sm:$0xff] }
 0xa84   : > { %1465 = vmatpush.bf16.msra.mxu2 %v1766_v53 }
 0xa85   : > { %v1911_v54 = vpop.eup %1910 }
 0xa86   : > { %v1235_v55 = vsel %vm529_vm1, %v1911_v54, 0.0 }
 0xa87   : > { %1236 = vadd.xlane.f32.xlu1 %v1235_v55  ;;  %v1876_v55 = vld [vmem:[%s2537_s10] ss:$0 sm:$0xff] }
 0xa89   : > { %v1913_v56 = vpop.eup %1912 }
 0xa8a   : > { %v1160_v58 = vmul.f32 %v1913_v56, %v1907_v39 }
 0xa8c   : > { %v1161_v59 = vpack.c.bf16 %v1160_v58, %v1160_v58  ;;  %v1764_v58 = vld [vmem:[%s2535_s8 + $0x28] sm:$0xff] }
 0xa8e   : > { %1700 = vmatmul.msk.bf16.vlgmr.msrb.gmra.mxu1 %vm529_vm1, %v1161_v59 }
 0xaa0   : > { %1241 = vrot.lane.b32.xlu1 %v2407_v57, %s2134_s19  ;;  %s1523_s19 = sshll.u32 %s1519_s6, 4  ;;  %s1524_s19 = int_to_ptr.hbm [resolvable:$true] %s1523_s19 }
 0xaa1   : > { %s2056_s16 = sshra.s32 %s1524_s19, 4  ;;  %s2057_s16 = int_to_ptr.hbm [resolvable:$true] %s2056_s16 }
 0xaa2   : > { %s2058_s22 = scalar_lea.hbm %s2057_s16, 8  ;;  %p2063_p3 = scmp.lt.s32.totalorder %s2057_s16, %s2538_s11 }
 0xaa3   : > { %p2059_p0 = scmp.ne.s32.totalorder %s2057_s16, %s2058_s22  ;;  %p2064_p4 = scmp.lt.s32.totalorder %s2062_s26, %s2058_s22 }
 0xaa5   : > { %p2060_p1 = pnand %p2059_p0, %p2237_p5  ;;  %p2065_p7 = por %p2064_p4, %p2063_p3 }
 0xaa7   : > { %p2061_p2 = pneg %p2060_p1 }
 0xaa9   : > { %p2066_p8 = pnand %p2065_p7, %p2061_p2 }
 0xaf7   : > { %v1082_v0 = vpop.f32.mrf.mxu1 }
 0xaf8   : > { %v1086_v1 = vpack.c.bf16 %v1082_v0, %v1082_v0 }
 0xafa   : > { %1697 = vmatmul.msk.bf16.vlgmr.msra.gmra.mxu3 %vm529_vm1, %v1086_v1  ;;  %v1237_v4 = vpop.xlane.xlu1 %1236  ;;  %v1762_v1 = vld [vmem:[%s2535_s8 + $0x18] sm:$0xff] }
 0xafb   : > { %1914 = vrcp.f32 %v1237_v4  ;;  %1347 = vmatpush.bf16.msra.mxu3 %v1758_v36 }
 0xaff   : > { %v1084_v3 = vpop.f32.mrf.mxu1  ;;  %1348 = vmatpush.bf16.msra.mxu3 %v1757_v37 }
 0xb01   : > { %v1915_v8 = vpop.eup %1914 }
 0xb02   : > { %v1239_v57 = vmul.f32 %v1915_v8, %v1911_v54  ;;  %v1765_v54 = vld [vmem:[%s2535_s8 + $0x30] sm:$0xff] }
 0xb03   : > { %1466 = vmatpush.bf16.msra.mxu2 %v1765_v54  ;;  %v1761_v8 = vld [vmem:[%s2535_s8 + $0x10] sm:$0xff] }
 0xb04   : > { %v1240_v11 = vpack.c.bf16 %v1239_v57, %v1239_v57 }
 0xb07   : > { %1467 = vmatpush.bf16.msra.mxu2 %v1764_v58 }
 0xb0b   : > { %v1179_v5 = vpop.f32.mrf.mxu1  ;;  %1468 = vmatpush.bf16.msra.mxu2 %v1763_v61 }
 0xb0c   : > { %v1183_v7 = vpack.c.bf16 %v1179_v5, %v1179_v5 }
 0xb0e   : > { %1701 = vmatmul.msk.bf16.vlgmr.msrb.gmra.mxu3 %vm529_vm1, %v1183_v7 }
 0xb0f   : > { %1469 = vmatpush.bf16.msra.mxu2 %v1762_v1  ;;  %v1879_v1 = vld [vmem:[#allocation8 + $0xe] ss:$0 sm:$0xff] }
 0xb12   : > { %v1242_v9 = vpop.permute.xlu1 %1241 }
 0xb13   : > { %v1247_v2 = vsel %vm569_vm2, %v1242_v9, 0  ;;  %v1181_v10 = vpop.f32.mrf.mxu1  ;;  %1470 = vmatpush.bf16.msra.mxu2 %v1761_v8 }
 0xb14   : > { %1256 = vmatpush.bf16.msrb.mxu0 %v1247_v2 }
 0xb17   : > { %1703 = vmatmul.msk.bf16.vlgmr.msrb.gmra.mxu0 %vm529_vm1, %v1240_v11  ;;  %v1760_v11 = vld [vmem:[%s2535_s8 + $0x8] sm:$0xff] }
 0xb18   : > { %1471 = vmatpush.bf16.msra.mxu2 %v1760_v11 }
 0xb7d   : > { %v1104_v14 = vpop.f32.mrf.mxu3 }
 0xb7e   : > { %v1124_v16 = vadd.f32 %v2429_v29, %v1104_v14 }
 0xb85   : > { %v1106_v15 = vpop.f32.mrf.mxu3 }
 0xb86   : > { %v1759_v15 = vld [vmem:[%s2535_s8] sm:$0xff] }
 0xb87   : > { %1472 = vmatpush.bf16.msra.mxu2 %v1759_v15 }
 0xb91   : > { %v1201_v17 = vpop.f32.mrf.mxu3 }
 0xb92   : > { %v1205_v18 = vadd.f32 %v1201_v17, %v1124_v16 }
 0xb94   : > { %v1258_v19 = vpop.f32.mrf.mxu0 }
 0xb95   : > { %v1262_v20 = vpack.c.bf16 %v1258_v19, %v1258_v19 }
 0xb97   : > { %1704 = vmatmul.msk.bf16.vlgmr.msra.gmra.mxu1 %vm529_vm1, %v1262_v20 }
 0xb99   : > { %v1203_v21 = vpop.f32.mrf.mxu3 }
 0xb9c   : > { %v1260_v22 = vpop.f32.mrf.mxu0 }
 0xc14   : > { %v1280_v24 = vpop.f32.mrf.mxu1 }
 0xc15   : > { %v1284_v25 = vadd.f32 %v1280_v24, %v1205_v18 }
 0xc17   : > { %v1287_v26 = vadd.f32 %v1873_v23, %v1284_v25 }
 0xc19   : > { %v1288_v27 = vadd.f32 %v1287_v26, %v2396_v32 }
 0xc1b   : > { %v1291_v28 = vsel %vm486_vm0, %v1288_v27, 0.0 }
 0xc1c   : > { %v1282_v30 = vpop.f32.mrf.mxu1  ;;  %1292 = vadd.xlane.f32.xlu0 %v1291_v28 }
 0xc8f   : > { %v1293_v31 = vpop.xlane.xlu0 %1292 }
 0xc90   : > { %v1294_v29 = vmul.f32 %v1293_v31, %v2378_v6 }
 0xc92   : > { %v1295_v33 = vsub.f32 %v1288_v27, %v1294_v29 }
 0xc94   : > { %v1296_v34 = vmul.f32 %v1295_v33, %v1295_v33 }
 0xc96   : > { %v1297_v35 = vsel %vm486_vm0, %v1296_v34, 0.0 }
 0xc97   : > { %1298 = vadd.xlane.f32.xlu2 %v1297_v35 }
 0xd0a   : > { %v1299_v38 = vpop.xlane.xlu2 %1298 }
 0xd0b   : > { %v1300_v39 = vmul.f32 %v1299_v38, %v2378_v6 }
 0xd0d   : > { %v1301_v32 = vadd.f32 1e-05, %v1300_v39 }
 0xd0f   : > { %1916 = vrsqrt.f32 %v1301_v32  ;;  %vm1308_vm8 = vweird.f32 %v1301_v32 }
 0xd15   : > { %v1917_v40 = vpop.eup %1916 }
 0xd16   : > { %v1303_v41 = vmul.f32 %v1917_v40, %v1301_v32  ;;  %vm1309_vm7 = vweird.f32 %v1917_v40 }
 0xd17   : > { %vm1310_vm9 = vmor %vm1308_vm8, %vm1309_vm7 }
 0xd18   : > { %v1304_v42 = vmul.f32 %v1917_v40, %v1303_v41 }
 0xd1a   : > { %v1305_v43 = vmul.f32 0.5, %v1304_v42  ;;  %v1877_v42 = vld [vmem:[#allocation8 + $0xc] ss:$0 sm:$0xff] }
 0xd1c   : > { %v1306_v44 = vsub.f32 1.5, %v1305_v43 }
 0xd1e   : > { %v1307_v45 = vmul.f32 %v1917_v40, %v1306_v44 }
 0xd20   : > { %v1311_v47 = vsel %vm1310_vm9, %v1917_v40, %v1307_v45 }
 0xd21   : > { %v1312_v49 = vmul.f32 %v1311_v47, %v1295_v33 }
 0xd23   : > { %v1314_v50 = vmul.f32 %v1874_v46, %v1312_v49 }
 0xd25   : > { %v2457_v51 = vadd.f32 %v1875_v48, %v1314_v50 }
 0xd27   : > { %v1317_v52 = vpack.c.bf16 %v2457_v51, %v2457_v51 }
 0xd29   : > { %1713 = vmatmul.msk.bf16.vlgmr.msra.gmra.mxu3 %vm486_vm0, %v1317_v52 }
 0xdac   : > { %v1350_v56 = vpop.f32.mrf.mxu3 }
 0xdad   : > { %v1351_v59 = vadd.f32 %v1876_v55, %v1350_v56 }
 0xdaf   : > { %v1355_v60 = vmul.f32 0.70710677, %v1351_v59  ;;  %v1354_v39 = vmul.f32 0.5, %v1351_v59 }
 0xdb1   : > { %v1356_v62 = vmul.f32 %v1355_v60, %v1355_v60 }
 0xdb3   : > { %v1357_v63 = vmin.f32 %v1356_v62, 16.0 }
 0xdb4   : > { %v1352_v0 = vpop.f32.mrf.mxu3 }
 0xdb5   : > { %v1358_v3 = vmul.f32 2.1237322e-06, %v1357_v63  ;;  %v1369_v4 = vmul.f32 3.8918573e-05, %v1357_v63 }
 0xdb7   : > { %v1359_v5 = vadd.f32 0.00028619796, %v1358_v3  ;;  %v1370_v7 = vadd.f32 0.001143296, %v1369_v4 }
 0xdb9   : > { %v1360_v57 = vmul.f32 %v1359_v5, %v1357_v63  ;;  %v1371_v9 = vmul.f32 %v1370_v7, %v1357_v63 }
 0xdbb   : > { %v1372_v2 = vadd.f32 0.014752088, %v1371_v9  ;;  %v1361_v10 = vadd.f32 0.0036580483, %v1360_v57 }
 0xdbd   : > { %v1373_v12 = vmul.f32 %v1372_v2, %v1357_v63  ;;  %v1362_v14 = vmul.f32 %v1361_v10, %v1357_v63 }
 0xdbf   : > { %v1374_v13 = vadd.f32 0.112945676, %v1373_v12  ;;  %v1363_v18 = vadd.f32 0.05243302, %v1362_v14 }
 0xdc1   : > { %v1375_v16 = vmul.f32 %v1374_v13, %v1357_v63  ;;  %v1364_v21 = vmul.f32 %v1363_v18, %v1357_v63 }
 0xdc3   : > { %v1376_v17 = vadd.f32 0.4994258, %v1375_v16  ;;  %v1365_v22 = vadd.f32 0.18741608, %v1364_v21 }
 0xdc5   : > { %v1377_v19 = vmul.f32 %v1376_v17, %v1357_v63  ;;  %v1366_v24 = vmul.f32 %v1365_v22, %v1357_v63  ;;  %v1878_v63 = vld [vmem:[#allocation8 + $0xd] ss:$0 sm:$0xff] }
 0xdc7   : > { %v1378_v20 = vadd.f32 1.0, %v1377_v19  ;;  %v1367_v28 = vadd.f32 1.1283791, %v1366_v24 }
 0xdc9   : > { %1918 = vrcp.f32 %v1378_v20  ;;  %v1390_v27 = vand.u32 2147483648, %v1378_v20  ;;  %v1388_v31 = vand.u32 2147483647, %v1378_v20  ;;  %vm1384_vm11 = vweird.f32 %v1378_v20 }
 0xdca   : > { %v1368_v34 = vmul.f32 %v1367_v28, %v1355_v60 }
 0xdcb   : > { %v1391_v33 = vor.u32 1.1754944e-38, %v1390_v27  ;;  %vm1389_vm13 = vcmp.eq.f32.partialorder %v1388_v31, 8.507059e+37 }
 0xdcf   : > { %v1919_v23 = vpop.eup %1918 }
 0xdd0   : > { %v1380_v25 = vmul.f32 %v1919_v23, %v1378_v20  ;;  %vm1385_vm10 = vweird.f32 %v1919_v23 }
 0xdd1   : > { %vm1386_vm12 = vmor %vm1384_vm11, %vm1385_vm10 }
 0xdd2   : > { %v1381_v26 = vsub.f32 1.0, %v1380_v25 }
 0xdd4   : > { %v1382_v30 = vmul.f32 %v1919_v23, %v1381_v26 }
 0xdd6   : > { %v1383_v29 = vadd.f32 %v1919_v23, %v1382_v30 }
 0xdd8   : > { %v1387_v35 = vsel %vm1386_vm12, %v1919_v23, %v1383_v29 }
 0xdd9   : > { %v1392_v36 = vsel %vm1389_vm13, %v1391_v33, %v1387_v35 }
 0xdda   : > { %v1393_v37 = vmul.f32 %v1392_v36, %v1368_v34 }
 0xddc   : > { %v1714_v38 = vclamps-f32 %v1393_v37, 1.0 }
 0xdde   : > { %v1396_v32 = vadd.f32 1.0, %v1714_v38 }
 0xde0   : > { %v1397_v40 = vmul.f32 %v1396_v32, %v1354_v39 }
 0xde2   : > { %v1398_v41 = vpack.c.bf16 %v1397_v40, %v1397_v40 }
 0xde4   : > { %1473 = vmatmul.bf16.vlgmr.msra.gmra.mxu2 %v1398_v41 }
 0xe67   : > { %v1474_v43 = vpop.f32.mrf.mxu2 }
 0xe68   : > { %v1475_v44 = vadd.f32 %v1877_v42, %v1474_v43 }
 0xe6a   : > { %v1478_v45 = vadd.f32 %v1475_v44, %v2457_v51 }
 0xe6c   : > { %v1481_v46 = vsel %vm486_vm0, %v1478_v45, 0.0 }
 0xe6d   : > { %1482 = vadd.xlane.f32.xlu1 %v1481_v46 }
 0xe6f   : > { %v1476_v47 = vpop.f32.mrf.mxu2 }
 0xee0   : > { %v1483_v48 = vpop.xlane.xlu1 %1482 }
 0xee1   : > { %v1484_v49 = vmul.f32 %v1483_v48, %v2378_v6 }
 0xee3   : > { %v1485_v50 = vsub.f32 %v1478_v45, %v1484_v49 }
 0xee5   : > { %v1486_v52 = vmul.f32 %v1485_v50, %v1485_v50 }
 0xee7   : > { %v1487_v53 = vsel %vm486_vm0, %v1486_v52, 0.0 }
 0xee8   : > { %1488 = vadd.xlane.f32.xlu0 %v1487_v53 }
 0xf5b   : > { %v1489_v54 = vpop.xlane.xlu0 %1488 }
 0xf5c   : > { %v1490_v55 = vmul.f32 %v1489_v54, %v2378_v6 }
 0xf5e   : > { %v1491_v56 = vadd.f32 1e-05, %v1490_v55 }
 0xf60   : > { %1920 = vrsqrt.f32 %v1491_v56  ;;  %vm1498_vm15 = vweird.f32 %v1491_v56 }
 0xf66   : > { %v1921_v51 = vpop.eup %1920 }
 0xf67   : > { %v1493_v58 = vmul.f32 %v1921_v51, %v1491_v56  ;;  %vm1499_vm14 = vweird.f32 %v1921_v51 }
 0xf68   : > { %vm1500_vm1 = vmor %vm1498_vm15, %vm1499_vm14 }
 0xf69   : > { %v1494_v59 = vmul.f32 %v1921_v51, %v1493_v58 }
 0xf6b   : > { %v1495_v60 = vmul.f32 0.5, %v1494_v59 }
 0xf6d   : > { %v1496_v61 = vsub.f32 1.5, %v1495_v60 }
 0xf6f   : > { %v1497_v62 = vmul.f32 %v1921_v51, %v1496_v61 }
 0xf71   : > { %v1501_v6 = vsel %vm1500_vm1, %v1921_v51, %v1497_v62 }
 0xf72   : > { %v1502_v0 = vmul.f32 %v1501_v6, %v1485_v50 }
 0xf74   : > { %v1504_v3 = vmul.f32 %v1878_v63, %v1502_v0 }
 0xf76   : > { %v1506_v4 = vadd.f32 %v1879_v1, %v1504_v3 }
 0xf78   : > { %1507 = vst.msk [vmem:[%s457_s13] sm:$0xff] %vm486_vm0, %v1506_v4 }
 0xf79   : > { %2069 = shalt.err (!%p2066_p8)
}
 0xf7a   : > { %1783 = dma.vmem_to_hbm [thread:$0]  (%p2237_p5), %s1522_s14, 128, %s1524_s19, %s1509_s21  }
 0xf7b PF: > { %s2557_s5 = sld [smem:[#allocation15_spill]]  ;;  %p1810_p9 = scmp.ge.s32.totalorder %s2116_s20, 2 }
 0xf7d   : > { %p1799_p10 = pnand %p1810_p9, %p2241_p6 }
 0xf7f   : > { %p1800_p11 = pneg %p1799_p10 }
 0xf81   : > { %s1535_s30 = sand.u32 1, %s2557_s5  }
 0xf82   : > { %s1536_s12 = scalar_lea.sflag [#allocation4], %s1535_s30 }
 0xf83   : > { %2099 = dma.done.wait (%p1800_p11), %s1536_s12, 128  }
 0xf84   : > { %2101 = vsyncadd (%p1800_p11), %s1536_s12, 4294967168  ;;  %s2559_s20 = sld [smem:[#allocation17_spill]]  ;;  %s2562_s17 = smov %s2108_s18 }
 0xf85   : > { %s2560_s15 = sld [smem:[#allocation16_spill]] }
 0xf86   : > { %s2561_s19 = sld [smem:[#allocation18_spill]] }
 0xf8a   : > { %p24_p12 = scmp.ge.s32.totalorder %s2559_s20, 4  }
 0xf8b   : > { %s2563_s18 = smov %s2560_s15 }
 0xf8c   :  { %26 = sbr.rel (!%p24_p12) target bundleno = 9 (0x9), region = 125 }
 0xf91   :  { %1542 = vsyncpa [#allocation3], 1 }
 0xf92   :  { %1544 = vsyncpa [#allocation3 + $0x1], 1 }
 0xf93   :  { %1545 = vsyncpa [#allocation6], 1 }
 0xf94   :  { %1546 = vsyncpa [#allocation9], 1 }
 0xf95   :  { %1547 = vsyncpa [#allocation4], 1 }
 0xf96   :  { %1549 = vsyncpa [#allocation4 + $0x1], 1 }

</bundles_post_ra>
